<compile_context>
chip_gen: v7x
topology: tpu7x:2x2x1
jax: 0.10.0
libtpu: 0.0.40
codegen_flags: <defaults>
</compile_context>

<pallas_src>
from functools import partial

import jax
import jax.numpy as jnp
from jax.experimental import pallas as pl
from jax.experimental.pallas import tpu as pltpu

LANE = 128   # channel dims zero-padded to a multiple of this (lane-dense stores)
TILE = 128   # node-dimension tile (rows/cols of A, rows of features)


def _round_up(x, m):
    return ((x + m - 1) // m) * m


def _pad2(x, rows, cols):
    r, c = x.shape
    return jnp.pad(x, ((0, rows - r), (0, cols - c)))


# ----------------------------- Pallas kernel -----------------------------

def _encoder_kernel(order_ref, a_ref, x_ref, w1_ref, b1_ref, w2_ref, b2_ref,
                    o_ref, acc_ref, xw1_ref, h_ref, hw2_ref, *, tm, tk):
    """Fused two-layer directed GCN encoder.

    phase 0:  h   = ReLU( A[order[0]] @ (x @ W1 + b1) )
    phase 1:  out =        A[order[1]] @ (h @ W2 + b2)
    """
    p = pl.program_id(0)            # 0: layer 1, 1: layer 2
    i = pl.program_id(1)            # output row tile
    k = pl.program_id(2)            # reduction tile over source nodes
    nk = pl.num_programs(2)
    koff = pl.multiple_of(k * tk, tk)
    moff = pl.multiple_of(i * tm, tm)

    # Cache the per-k-tile feature transform ONCE (during the i == 0 sweep) so
    # it is not recomputed for every output row tile.
    @pl.when((p == 0) & (i == 0))
    def _():
        xw = jnp.dot(x_ref[...].astype(jnp.bfloat16),
                     w1_ref[...].astype(jnp.bfloat16),
                     preferred_element_type=jnp.float32) + b1_ref[...]
        xw1_ref[pl.ds(koff, tk), :] = xw.astype(jnp.bfloat16)

    @pl.when((p == 1) & (i == 0))
    def _():
        hw = jnp.dot(h_ref[pl.ds(koff, tk), :],
                     w2_ref[...].astype(jnp.bfloat16),
                     preferred_element_type=jnp.float32) + b2_ref[...]
        hw2_ref[pl.ds(koff, tk), :] = hw.astype(jnp.bfloat16)

    # f32 accumulator over the source-node (k) axis.
    @pl.when(k == 0)
    def _():
        acc_ref[...] = jnp.zeros_like(acc_ref)

    a_blk = a_ref[0]                                  # (tm, tk) bf16 adjacency tile

    @pl.when(p == 0)
    def _():
        acc_ref[...] += jnp.dot(a_blk, xw1_ref[pl.ds(koff, tk), :],
                                preferred_element_type=jnp.float32)

    @pl.when(p == 1)
    def _():
        acc_ref[...] += jnp.dot(a_blk, hw2_ref[pl.ds(koff, tk), :],
                                preferred_element_type=jnp.float32)

    # Finalize this row tile.
    @pl.when((p == 0) & (k == nk - 1))
    def _():
        h = jnp.maximum(acc_ref[...], 0.0)            # ReLU in f32
        h_ref[pl.ds(moff, tm), :] = h.astype(jnp.bfloat16)
        o_ref[0] = h                                  # phase-0 slab (discarded later)

    @pl.when((p == 1) & (k == nk - 1))
    def _():
        o_ref[0] = acc_ref[...]


def fused_gcn_encoder(a_stack, x, w1, b1, w2, b2, order, *, tm=TILE, tk=TILE):
    """a_stack: [2, Np, Np] bf16; x: [Np, Cin_p] f32; weights padded to 128 lanes.

    Returns the padded encoder output [Np, Cw] (f32)."""
    n_pad, cin = x.shape
    cw = w1.shape[1]
    grid = (2, n_pad // tm, n_pad // tk)

    out = pl.pallas_call(
        partial(_encoder_kernel, tm=tm, tk=tk),
        out_shape=jax.ShapeDtypeStruct((2, n_pad, cw), jnp.float32),
        grid_spec=pltpu.PrefetchScalarGridSpec(
            num_scalar_prefetch=1,
            grid=grid,
            in_specs=[
                # Stacked adjacencies; scalar-prefetched `order` picks which one
                # each phase aggregates with (source vs. target encoder).
                pl.BlockSpec((1, tm, tk),
                             lambda p, i, k, ord_ref: (ord_ref[p], i, k)),
                pl.BlockSpec((tk, cin), lambda p, i, k, ord_ref: (k, 0)),   # x
                pl.BlockSpec((cin, cw), lambda p, i, k, ord_ref: (0, 0)),   # W1
                pl.BlockSpec((1, cw),   lambda p, i, k, ord_ref: (0, 0)),   # b1
                pl.BlockSpec((cw, cw),  lambda p, i, k, ord_ref: (0, 0)),   # W2
                pl.BlockSpec((1, cw),   lambda p, i, k, ord_ref: (0, 0)),   # b2
            ],
            out_specs=pl.BlockSpec((1, tm, cw),
                                   lambda p, i, k, ord_ref: (p, i, 0)),
            scratch_shapes=[
                pltpu.VMEM((tm, cw), jnp.float32),       # f32 accumulator
                pltpu.VMEM((n_pad, cw), jnp.bfloat16),   # cached x @ W1 + b1
                pltpu.VMEM((n_pad, cw), jnp.bfloat16),   # layer-1 activation h
                pltpu.VMEM((n_pad, cw), jnp.bfloat16),   # cached h @ W2 + b2
            ]),
        compiler_params=pltpu.CompilerParams(
            dimension_semantics=("arbitrary", "arbitrary", "arbitrary"),
            vmem_limit_bytes=48 * 1024 * 1024),          # safe on v5e/v6e/v7x
    )(order, a_stack, x, w1, b1, w2, b2)
    return out[1]                                        # phase-1 slab = encoder output


# ----------------------------- Graph glue (plain JAX) -----------------------------

def build_norm_adj(edge_index, num_nodes, alpha, beta, self_loops):
    """Dense normalized adjacency: A[t, s] = d_in[t]^-beta * #(s->t) * d_out[s]^-alpha."""
    row, col = edge_index[0], edge_index[1]
    if self_loops:
        loop = jnp.arange(num_nodes, dtype=edge_index.dtype)
        row = jnp.concatenate([row, loop])
        col = jnp.concatenate([col, loop])
    ones = jnp.ones(row.shape[0], jnp.float32)
    deg_out = jnp.zeros((num_nodes,), jnp.float32).at[row].add(ones)
    deg_in = jnp.zeros((num_nodes,), jnp.float32).at[col].add(ones)
    # clamp before the power so the discarded branch never produces inf
    deg_out_inv = jnp.where(deg_out > 0, jnp.maximum(deg_out, 1.0) ** (-alpha), 0.0)
    deg_in_inv = jnp.where(deg_in > 0, jnp.maximum(deg_in, 1.0) ** (-beta), 0.0)
    adj = jnp.zeros((num_nodes, num_nodes), jnp.float32).at[col, row].add(ones)
    return deg_in_inv[:, None] * adj * deg_out_inv[None, :]


# ----------------------------- Parameter init & padding -----------------------------

def init_linear(key, cin, cout):
    """nn.Linear default init (uniform +-1/sqrt(cin)); W stored as [cin, cout]."""
    kw, kb = jax.random.split(key)
    bound = 1.0 / jnp.sqrt(jnp.float32(cin))
    w = jax.random.uniform(kw, (cin, cout), jnp.float32, -bound, bound)
    b = jax.random.uniform(kb, (1, cout), jnp.float32, -bound, bound)
    return w, b


def _pad_encoder_params(params, cin_p, cw):
    (w1, b1), (w2, b2) = params
    return ((_pad2(w1, cin_p, cw), _pad2(b1, 1, cw)),
            (_pad2(w2, cw, cw), _pad2(b2, 1, cw)))


# ----------------------------- Top-level forward -----------------------------

def directed_gcn_conv_encoder(s, t, edge_index, source_params, target_params,
                              *, alpha=0.5, beta=0.5, self_loops=True):
    n, cin = s.shape
    hidden = source_params[0][0].shape[1]
    cout = source_params[1][0].shape[1]

    n_pad = _round_up(n, TILE)
    cin_p = _round_up(cin, LANE)
    cw = max(_round_up(hidden, LANE), _round_up(cout, LANE))

    a_fwd = build_norm_adj(edge_index, n, alpha, beta, self_loops)
    if alpha == beta:                 # a_rev == a_fwd.T -> build A only once
        a_rev = a_fwd.T
    else:
        a_rev = build_norm_adj(jnp.flip(edge_index, axis=0), n, alpha, beta, self_loops)

    a_stack = jnp.zeros((2, n_pad, n_pad), jnp.float32)
    a_stack = a_stack.at[0, :n, :n].set(a_fwd).at[1, :n, :n].set(a_rev)
    a_stack = a_stack.astype(jnp.bfloat16)      # bf16 adjacency: halves HBM/VMEM traffic

    s_pad = _pad2(s, n_pad, cin_p)
    t_pad = _pad2(t, n_pad, cin_p)
    sp = _pad_encoder_params(source_params, cin_p, cw)
    tp = _pad_encoder_params(target_params, cin_p, cw)

    order_src = jnp.array([0, 1], jnp.int32)    # conv1 on E, conv2 on flip(E)
    order_tgt = jnp.array([1, 0], jnp.int32)    # conv1 on flip(E), conv2 on E

    s_out = fused_gcn_encoder(a_stack, s_pad, sp[0][0], sp[0][1], sp[1][0], sp[1][1],
                              order_src)
    t_out = fused_gcn_encoder(a_stack, t_pad, tp[0][0], tp[0][1], tp[1][0], tp[1][1],
                              order_tgt)
    return s_out[:n, :cout], t_out[:n, :cout]


# ----------------------------- Pure-JAX f32 reference -----------------------------

def _ref_layer(a, x, w, b, relu):
    out = a @ (x @ w + b)
    return jnp.maximum(out, 0.0) if relu else out


def _ref_forward(s, t, edge_index, sp, tp, alpha, beta, self_loops):
    n = s.shape[0]
    a_f = build_norm_adj(edge_index, n, alpha, beta, self_loops)
    a_r = a_f.T if alpha == beta else build_norm_adj(
        jnp.flip(edge_index, axis=0), n, alpha, beta, self_loops)
    (sw1, sb1), (sw2, sb2) = sp
    (tw1, tb1), (tw2, tb2) = tp
    s_out = _ref_layer(a_r, _ref_layer(a_f, s, sw1, sb1, True), sw2, sb2, False)
    t_out = _ref_layer(a_f, _ref_layer(a_r, t, tw1, tb1, True), tw2, tb2, False)
    return s_out, t_out


# ----------------------------- Main -----------------------------

if __name__ == "__main__":
    key = jax.random.PRNGKey(0)
    num_nodes, num_edges = 256, 1024          # multi-tile grid: (2, 2, 2)
    in_channels, hidden_channels, out_channels = 16, 32, 8
    alpha, beta, self_loops = 0.5, 0.5, True

    k_s, k_t, k_e, k_p = jax.random.split(key, 4)
    s = jax.random.normal(k_s, (num_nodes, in_channels), jnp.float32)
    t = jax.random.normal(k_t, (num_nodes, in_channels), jnp.float32)
    edge_index = jax.random.randint(k_e, (2, num_edges), 0, num_nodes, jnp.int32)

    k1, k2, k3, k4 = jax.random.split(k_p, 4)
    source_params = (init_linear(k1, in_channels, hidden_channels),
                     init_linear(k2, hidden_channels, out_channels))
    target_params = (init_linear(k3, in_channels, hidden_channels),
                     init_linear(k4, hidden_channels, out_channels))

    s_out, t_out = directed_gcn_conv_encoder(
        s, t, edge_index, source_params, target_params,
        alpha=alpha, beta=beta, self_loops=self_loops)
    jax.block_until_ready((s_out, t_out))

    s_ref, t_ref = _ref_forward(s, t, edge_index, source_params, target_params,
                                alpha, beta, self_loops)
    assert s_out.shape == (num_nodes, out_channels)
    assert t_out.shape == (num_nodes, out_channels)
    # Kernel uses bf16 adjacency / feature-transform operands with f32 accumulation.
    assert jnp.allclose(s_out, s_ref, atol=3e-2, rtol=3e-2)
    assert jnp.allclose(t_out, t_ref, atol=3e-2, rtol=3e-2)

    print("KERNEL_OK")
</pallas_src>

<mosaic_0001>
module attributes {stable_mosaic.version = 11 : i64} {
  func.func @_encoder_kernel(%arg0: i32, %arg1: i32, %arg2: i32, %arg3: memref<2xi32, #tpu.memory_space<smem>>, %arg4: memref<1x128x128xbf16, #tpu.memory_space<vmem>>, %arg5: memref<128x128xf32, #tpu.memory_space<vmem>>, %arg6: memref<128x128xf32, #tpu.memory_space<vmem>>, %arg7: memref<1x128xf32, #tpu.memory_space<vmem>>, %arg8: memref<128x128xf32, #tpu.memory_space<vmem>>, %arg9: memref<1x128xf32, #tpu.memory_space<vmem>>, %arg10: memref<1x128x128xf32, #tpu.memory_space<vmem>>, %arg11: memref<128x128xf32, #tpu.memory_space<vmem>>, %arg12: memref<256x128xbf16, #tpu.memory_space<vmem>>, %arg13: memref<256x128xbf16, #tpu.memory_space<vmem>>, %arg14: memref<256x128xbf16, #tpu.memory_space<vmem>>) attributes {dimension_semantics = [#tpu.dimension_semantics<arbitrary>, #tpu.dimension_semantics<arbitrary>, #tpu.dimension_semantics<arbitrary>], iteration_bounds = array<i64: 2, 2, 2>, scalar_prefetch = 1 : i64, scratch_operands = 4 : i64, tpu.core_type = #tpu.core_type<tc>, window_params = [{transform_indices = @transform_0, window_bounds = array<i64: 1, 128, 128>}, {transform_indices = @transform_1, window_bounds = array<i64: 128, 128>}, {pipeline_mode = #tpu.pipeline_mode<synchronous>, transform_indices = @transform_2, window_bounds = array<i64: 128, 128>}, {pipeline_mode = #tpu.pipeline_mode<synchronous>, transform_indices = @transform_3, window_bounds = array<i64: 1, 128>}, {pipeline_mode = #tpu.pipeline_mode<synchronous>, transform_indices = @transform_4, window_bounds = array<i64: 128, 128>}, {pipeline_mode = #tpu.pipeline_mode<synchronous>, transform_indices = @transform_5, window_bounds = array<i64: 1, 128>}, {transform_indices = @transform_6, window_bounds = array<i64: 1, 128, 128>}]} {
    %c128_i32 = arith.constant 128 : i32
    %0 = arith.muli %arg2, %c128_i32 : i32
    %1 = tpu.assume_multiple %0, 128 : i32
    %c128_i32_0 = arith.constant 128 : i32
    %2 = arith.muli %arg1, %c128_i32_0 : i32
    %3 = tpu.assume_multiple %2, 128 : i32
    %c0_i32 = arith.constant 0 : i32
    %4 = arith.cmpi eq, %arg0, %c0_i32 : i32
    %c0_i32_1 = arith.constant 0 : i32
    %5 = arith.cmpi eq, %arg1, %c0_i32_1 : i32
    %6 = arith.andi %4, %5 : i1
    %7 = arith.extui %6 : i1 to i32
    %c0_i32_2 = arith.constant 0 : i32
    %8 = arith.cmpi ne, %7, %c0_i32_2 : i32
    scf.if %8 {
      %c0_19 = arith.constant 0 : index
      %c0_20 = arith.constant 0 : index
      %35 = vector.load %arg5[%c0_19, %c0_20] : memref<128x128xf32, #tpu.memory_space<vmem>>, vector<128x128xf32>
      %36 = arith.truncf %35 : vector<128x128xf32> to vector<128x128xbf16>
      %c0_21 = arith.constant 0 : index
      %c0_22 = arith.constant 0 : index
      %37 = vector.load %arg6[%c0_21, %c0_22] : memref<128x128xf32, #tpu.memory_space<vmem>>, vector<128x128xf32>
      %38 = arith.truncf %37 : vector<128x128xf32> to vector<128x128xbf16>
      %cst = arith.constant dense<0.000000e+00> : vector<128x128xf32>
      %39 = tpu.matmul %36, %38, %cst {dimension_numbers = #tpu.dot_dimension_numbers<[1], [0], [0], [1], [0, 0, 1, 1], [], []>} : vector<128x128xbf16>, vector<128x128xbf16>, vector<128x128xf32> -> vector<128x128xf32>
      %c0_23 = arith.constant 0 : index
      %c0_24 = arith.constant 0 : index
      %40 = vector.load %arg7[%c0_23, %c0_24] : memref<1x128xf32, #tpu.memory_space<vmem>>, vector<1x128xf32>
      %41 = vector.broadcast %40 : vector<1x128xf32> to vector<128x128xf32>
      %42 = arith.addf %39, %41 : vector<128x128xf32>
      %43 = arith.truncf %42 : vector<128x128xf32> to vector<128x128xbf16>
      %44 = arith.index_cast %1 : i32 to index
      %c0_25 = arith.constant 0 : index
      %45 = vector.load %arg12[%44, %c0_25] : memref<256x128xbf16, #tpu.memory_space<vmem>>, vector<128x128xbf16>
      tpu.vector_store %arg12[%44, %c0_25], %43 {strides = array<i32>} : memref<256x128xbf16, #tpu.memory_space<vmem>>, vector<128x128xbf16>,
    } else {
    }
    %c1_i32 = arith.constant 1 : i32
    %9 = arith.cmpi eq, %arg0, %c1_i32 : i32
    %c0_i32_3 = arith.constant 0 : i32
    %10 = arith.cmpi eq, %arg1, %c0_i32_3 : i32
    %11 = arith.andi %9, %10 : i1
    %12 = arith.extui %11 : i1 to i32
    %c0_i32_4 = arith.constant 0 : i32
    %13 = arith.cmpi ne, %12, %c0_i32_4 : i32
    scf.if %13 {
      %35 = arith.index_cast %1 : i32 to index
      %c0_19 = arith.constant 0 : index
      %36 = vector.load %arg13[%35, %c0_19] : memref<256x128xbf16, #tpu.memory_space<vmem>>, vector<128x128xbf16>
      %c0_20 = arith.constant 0 : index
      %c0_21 = arith.constant 0 : index
      %37 = vector.load %arg8[%c0_20, %c0_21] : memref<128x128xf32, #tpu.memory_space<vmem>>, vector<128x128xf32>
      %38 = arith.truncf %37 : vector<128x128xf32> to vector<128x128xbf16>
      %cst = arith.constant dense<0.000000e+00> : vector<128x128xf32>
      %39 = tpu.matmul %36, %38, %cst {dimension_numbers = #tpu.dot_dimension_numbers<[1], [0], [0], [1], [0, 0, 1, 1], [], []>} : vector<128x128xbf16>, vector<128x128xbf16>, vector<128x128xf32> -> vector<128x128xf32>
      %c0_22 = arith.constant 0 : index
      %c0_23 = arith.constant 0 : index
      %40 = vector.load %arg9[%c0_22, %c0_23] : memref<1x128xf32, #tpu.memory_space<vmem>>, vector<1x128xf32>
      %41 = vector.broadcast %40 : vector<1x128xf32> to vector<128x128xf32>
      %42 = arith.addf %39, %41 : vector<128x128xf32>
      %43 = arith.truncf %42 : vector<128x128xf32> to vector<128x128xbf16>
      %44 = arith.index_cast %1 : i32 to index
      %c0_24 = arith.constant 0 : index
      %45 = vector.load %arg14[%44, %c0_24] : memref<256x128xbf16, #tpu.memory_space<vmem>>, vector<128x128xbf16>
      tpu.vector_store %arg14[%44, %c0_24], %43 {strides = array<i32>} : memref<256x128xbf16, #tpu.memory_space<vmem>>, vector<128x128xbf16>,
    } else {
    }
    %c0_i32_5 = arith.constant 0 : i32
    %14 = arith.cmpi eq, %arg2, %c0_i32_5 : i32
    %15 = arith.extui %14 : i1 to i32
    %c0_i32_6 = arith.constant 0 : i32
    %16 = arith.cmpi ne, %15, %c0_i32_6 : i32
    scf.if %16 {
      %cst = arith.constant 0.000000e+00 : f32
      %35 = vector.broadcast %cst : f32 to vector<128x128xf32>
      %c0_19 = arith.constant 0 : index
      %c0_20 = arith.constant 0 : index
      %36 = vector.load %arg11[%c0_19, %c0_20] : memref<128x128xf32, #tpu.memory_space<vmem>>, vector<128x128xf32>
      tpu.vector_store %arg11[%c0_19, %c0_20], %35 {strides = array<i32>} : memref<128x128xf32, #tpu.memory_space<vmem>>, vector<128x128xf32>,
    } else {
    }
    %c0 = arith.constant 0 : index
    %c0_7 = arith.constant 0 : index
    %c0_8 = arith.constant 0 : index
    %17 = vector.load %arg4[%c0, %c0_7, %c0_8] : memref<1x128x128xbf16, #tpu.memory_space<vmem>>, vector<1x128x128xbf16>
    %18 = vector.shape_cast %17 : vector<1x128x128xbf16> to vector<128x128xbf16>
    %c0_i32_9 = arith.constant 0 : i32
    %19 = arith.cmpi eq, %arg0, %c0_i32_9 : i32
    %20 = arith.extui %19 : i1 to i32
    %c0_i32_10 = arith.constant 0 : i32
    %21 = arith.cmpi ne, %20, %c0_i32_10 : i32
    scf.if %21 {
      %c0_19 = arith.constant 0 : index
      %c0_20 = arith.constant 0 : index
      %35 = vector.load %arg11[%c0_19, %c0_20] : memref<128x128xf32, #tpu.memory_space<vmem>>, vector<128x128xf32>
      %36 = arith.index_cast %1 : i32 to index
      %c0_21 = arith.constant 0 : index
      %37 = vector.load %arg12[%36, %c0_21] : memref<256x128xbf16, #tpu.memory_space<vmem>>, vector<128x128xbf16>
      %cst = arith.constant dense<0.000000e+00> : vector<128x128xf32>
      %38 = tpu.matmul %18, %37, %cst {dimension_numbers = #tpu.dot_dimension_numbers<[1], [0], [0], [1], [0, 0, 1, 1], [], []>} : vector<128x128xbf16>, vector<128x128xbf16>, vector<128x128xf32> -> vector<128x128xf32>
      %39 = arith.addf %35, %38 : vector<128x128xf32>
      %c0_22 = arith.constant 0 : index
      %c0_23 = arith.constant 0 : index
      %40 = vector.load %arg11[%c0_22, %c0_23] : memref<128x128xf32, #tpu.memory_space<vmem>>, vector<128x128xf32>
      tpu.vector_store %arg11[%c0_22, %c0_23], %39 {strides = array<i32>} : memref<128x128xf32, #tpu.memory_space<vmem>>, vector<128x128xf32>,
    } else {
    }
    %c1_i32_11 = arith.constant 1 : i32
    %22 = arith.cmpi eq, %arg0, %c1_i32_11 : i32
    %23 = arith.extui %22 : i1 to i32
    %c0_i32_12 = arith.constant 0 : i32
    %24 = arith.cmpi ne, %23, %c0_i32_12 : i32
    scf.if %24 {
      %c0_19 = arith.constant 0 : index
      %c0_20 = arith.constant 0 : index
      %35 = vector.load %arg11[%c0_19, %c0_20] : memref<128x128xf32, #tpu.memory_space<vmem>>, vector<128x128xf32>
      %36 = arith.index_cast %1 : i32 to index
      %c0_21 = arith.constant 0 : index
      %37 = vector.load %arg14[%36, %c0_21] : memref<256x128xbf16, #tpu.memory_space<vmem>>, vector<128x128xbf16>
      %cst = arith.constant dense<0.000000e+00> : vector<128x128xf32>
      %38 = tpu.matmul %18, %37, %cst {dimension_numbers = #tpu.dot_dimension_numbers<[1], [0], [0], [1], [0, 0, 1, 1], [], []>} : vector<128x128xbf16>, vector<128x128xbf16>, vector<128x128xf32> -> vector<128x128xf32>
      %39 = arith.addf %35, %38 : vector<128x128xf32>
      %c0_22 = arith.constant 0 : index
      %c0_23 = arith.constant 0 : index
      %40 = vector.load %arg11[%c0_22, %c0_23] : memref<128x128xf32, #tpu.memory_space<vmem>>, vector<128x128xf32>
      tpu.vector_store %arg11[%c0_22, %c0_23], %39 {strides = array<i32>} : memref<128x128xf32, #tpu.memory_space<vmem>>, vector<128x128xf32>,
    } else {
    }
    %c0_i32_13 = arith.constant 0 : i32
    %25 = arith.cmpi eq, %arg0, %c0_i32_13 : i32
    %c1_i32_14 = arith.constant 1 : i32
    %26 = arith.cmpi eq, %arg2, %c1_i32_14 : i32
    %27 = arith.andi %25, %26 : i1
    %28 = arith.extui %27 : i1 to i32
    %c0_i32_15 = arith.constant 0 : i32
    %29 = arith.cmpi ne, %28, %c0_i32_15 : i32
    scf.if %29 {
      %c0_19 = arith.constant 0 : index
      %c0_20 = arith.constant 0 : index
      %35 = vector.load %arg11[%c0_19, %c0_20] : memref<128x128xf32, #tpu.memory_space<vmem>>, vector<128x128xf32>
      %cst = arith.constant 0.000000e+00 : f32
      %36 = vector.broadcast %cst : f32 to vector<128x128xf32>
      %37 = arith.maximumf %35, %36 : vector<128x128xf32>
      %38 = arith.truncf %37 : vector<128x128xf32> to vector<128x128xbf16>
      %39 = arith.index_cast %3 : i32 to index
      %c0_21 = arith.constant 0 : index
      %40 = vector.load %arg13[%39, %c0_21] : memref<256x128xbf16, #tpu.memory_space<vmem>>, vector<128x128xbf16>
      tpu.vector_store %arg13[%39, %c0_21], %38 {strides = array<i32>} : memref<256x128xbf16, #tpu.memory_space<vmem>>, vector<128x128xbf16>,
      %c0_22 = arith.constant 0 : index
      %c0_23 = arith.constant 0 : index
      %c0_24 = arith.constant 0 : index
      %41 = vector.load %arg10[%c0_22, %c0_23, %c0_24] : memref<1x128x128xf32, #tpu.memory_space<vmem>>, vector<1x128x128xf32>
      %42 = vector.shape_cast %41 : vector<1x128x128xf32> to vector<128x128xf32>
      %43 = vector.shape_cast %37 : vector<128x128xf32> to vector<1x128x128xf32>
      tpu.vector_store %arg10[%c0_22, %c0_23, %c0_24], %43 {strides = array<i32>} : memref<1x128x128xf32, #tpu.memory_space<vmem>>, vector<1x128x128xf32>,
    } else {
    }
    %c1_i32_16 = arith.constant 1 : i32
    %30 = arith.cmpi eq, %arg0, %c1_i32_16 : i32
    %c1_i32_17 = arith.constant 1 : i32
    %31 = arith.cmpi eq, %arg2, %c1_i32_17 : i32
    %32 = arith.andi %30, %31 : i1
    %33 = arith.extui %32 : i1 to i32
    %c0_i32_18 = arith.constant 0 : i32
    %34 = arith.cmpi ne, %33, %c0_i32_18 : i32
    scf.if %34 {
      %c0_19 = arith.constant 0 : index
      %c0_20 = arith.constant 0 : index
      %35 = vector.load %arg11[%c0_19, %c0_20] : memref<128x128xf32, #tpu.memory_space<vmem>>, vector<128x128xf32>
      %c0_21 = arith.constant 0 : index
      %c0_22 = arith.constant 0 : index
      %c0_23 = arith.constant 0 : index
      %36 = vector.load %arg10[%c0_21, %c0_22, %c0_23] : memref<1x128x128xf32, #tpu.memory_space<vmem>>, vector<1x128x128xf32>
      %37 = vector.shape_cast %36 : vector<1x128x128xf32> to vector<128x128xf32>
      %38 = vector.shape_cast %35 : vector<128x128xf32> to vector<1x128x128xf32>
      tpu.vector_store %arg10[%c0_21, %c0_22, %c0_23], %38 {strides = array<i32>} : memref<1x128x128xf32, #tpu.memory_space<vmem>>, vector<1x128x128xf32>,
    } else {
    }
    return
  }
  func.func @transform_0(%arg0: i32, %arg1: i32, %arg2: i32, %arg3: memref<2xi32, #tpu.memory_space<smem>>) -> (i32, i32, i32) {
    %0 = arith.index_cast %arg0 : i32 to index
    %1 = memref.load %arg3[%0] : memref<2xi32, #tpu.memory_space<smem>>
    %c0_i32 = arith.constant 0 : i32
    return %1, %arg1, %arg2 : i32, i32, i32
  }
  func.func @transform_1(%arg0: i32, %arg1: i32, %arg2: i32, %arg3: memref<2xi32, #tpu.memory_space<smem>>) -> (i32, i32) {
    %c0_i32 = arith.constant 0 : i32
    %c0_i32_0 = arith.constant 0 : i32
    return %arg2, %c0_i32 : i32, i32
  }
  func.func @transform_2(%arg0: i32, %arg1: i32, %arg2: i32, %arg3: memref<2xi32, #tpu.memory_space<smem>>) -> (i32, i32) {
    %c0_i32 = arith.constant 0 : i32
    %c0_i32_0 = arith.constant 0 : i32
    %c0_i32_1 = arith.constant 0 : i32
    return %c0_i32, %c0_i32_0 : i32, i32
  }
  func.func @transform_3(%arg0: i32, %arg1: i32, %arg2: i32, %arg3: memref<2xi32, #tpu.memory_space<smem>>) -> (i32, i32) {
    %c0_i32 = arith.constant 0 : i32
    %c0_i32_0 = arith.constant 0 : i32
    %c0_i32_1 = arith.constant 0 : i32
    return %c0_i32, %c0_i32_0 : i32, i32
  }
  func.func @transform_4(%arg0: i32, %arg1: i32, %arg2: i32, %arg3: memref<2xi32, #tpu.memory_space<smem>>) -> (i32, i32) {
    %c0_i32 = arith.constant 0 : i32
    %c0_i32_0 = arith.constant 0 : i32
    %c0_i32_1 = arith.constant 0 : i32
    return %c0_i32, %c0_i32_0 : i32, i32
  }
  func.func @transform_5(%arg0: i32, %arg1: i32, %arg2: i32, %arg3: memref<2xi32, #tpu.memory_space<smem>>) -> (i32, i32) {
    %c0_i32 = arith.constant 0 : i32
    %c0_i32_0 = arith.constant 0 : i32
    %c0_i32_1 = arith.constant 0 : i32
    return %c0_i32, %c0_i32_0 : i32, i32
  }
  func.func @transform_6(%arg0: i32, %arg1: i32, %arg2: i32, %arg3: memref<2xi32, #tpu.memory_space<smem>>) -> (i32, i32, i32) {
    %c0_i32 = arith.constant 0 : i32
    %c0_i32_0 = arith.constant 0 : i32
    return %arg0, %arg1, %c0_i32 : i32, i32, i32
  }
}

</mosaic_0001>

<bundles_post_ra>
// kernel: tpu_custom_call.1
= control target key start
LH: loop header
LB: loop body
LE: loop exit
PB: predicated region body
PF: predicated region fallthrough
CT: control target
= control target key end

     0   :  { %s3005_s0 = inlined_call_operand.hbm [shape: s32[2], index: 0, kind: input, shape index: {}]   ;;  %s3006_s1 = inlined_call_operand.hbm [shape: bf16[2,256,256], index: 1, kind: input, shape index: {}]   ;;  %s3007_s2 = inlined_call_operand.hbm [shape: f32[256,128], index: 2, kind: input, shape index: {}]   ;;  %s3008_s3 = inlined_call_operand.hbm [shape: f32[128,128], index: 3, kind: input, shape index: {}]   ;;  %s3009_s4 = inlined_call_operand.vmem [shape: f32[1,128], index: 4, kind: input, shape index: {}]   ;;  %s3010_s5 = inlined_call_operand.hbm [shape: f32[128,128], index: 5, kind: input, shape index: {}]   ;;  %s3011_s6 = inlined_call_operand.vmem [shape: f32[1,128], index: 6, kind: input, shape index: {}]   ;;  %s3012_s7 = inlined_call_operand.hbm [shape: f32[2,256,128], index: 7, kind: output, shape index: {}]  }
   0x1   :  { %3040 = sst [smem:[#allocation41_spill]] %s3008_s3  ;;  %s1945_s26 = scalar_lea.hbm %s3005_s0, 16 }
   0x2   :  { %3041 = sst [smem:[#allocation42_spill]] %s3009_s4  ;;  %p1946_p0 = scmp.ne.s32.totalorder %s3005_s0, %s1945_s26 }
   0x3   :  { %3042 = sst [smem:[#allocation43_spill]] %s3010_s5  ;;  %p1949_p1 = scmp.lt.u32.totalorder %s1945_s26, %s3005_s0 }
   0x4   :  { %3043 = sst [smem:[#allocation44_spill]] %s3011_s6 }
   0x5   :  { %3044 = sst [smem:[#allocation45_spill]] %s3012_s7  ;;  %p1951_p2 = pnand %p1949_p1, %p1946_p0 }
   0x7   :  { %1954 = shalt.err (!%p1951_p2)  }
   0x8   :  { %s2249_s8 = smov [#allocation7]  }
   0x9   :  { %13 = dma.hbm_to_smem %s3005_s0, 16, %s2249_s8, [#allocation6] }
   0xa   :  { %2163 = dma.done.wait [#allocation6], 16 }
   0xb   :  { %2164 = vsyncadd [#allocation6], 4294967280 }
   0xc   :  { %15 = sfence }
   0xd   :  { %16 = vsyncpa [#allocation9], 0 }
   0xe   :  { %18 = vsyncpa [#allocation9 + $0x1], 0 }
   0xf   :  { %19 = vsyncpa [#allocation12], 0 }
  0x10   :  { %21 = vsyncpa [#allocation12 + $0x1], 0 }
  0x11   :  { %22 = vsyncpa [#allocation15], 0 }
  0x12   :  { %23 = vsyncpa [#allocation10], 0 }
  0x13   :  { %25 = vsyncpa [#allocation10 + $0x1], 0  ;;  %s2314_s11 = smov 0   ;;  %s2316_s12 = smov 0  }
  0x14   :  { %s2318_s13 = smov 0   ;;  %s2320_s14 = smov 0  }
  0x15   :  { %s2322_s15 = smov 0   ;;  %s2324_s0 = smov 0  }
  0x16   :  { %s2326_s16 = smov 0   ;;  %s2328_s17 = smov 0  }
  0x17   :  { %s2330_s18 = smov 0   ;;  %s2332_s19 = smov 0  }
  0x18   :  { %s2334_s20 = smov 0   ;;  %s2336_s21 = smov 0  }
  0x19   :  { %s2338_s22 = smov 0   ;;  %s2340_s23 = smov 0  }
  0x1a   :  { %s2342_s24 = smov 0   ;;  %s2344_s25 = smov 0  }
  0x1b LB: > { %3045 = sst [smem:[#allocation25_spill]] %s2187_s11  ;;  %s2391_s26 = sadd.s32 4294967295, %s2247_s25   ;;  %s2247_s25 = sphi %s2344_s25, %s31_s25   ;;  %s2243_s24 = sphi %s2342_s24, %s3121_s24   ;;  %s2239_s23 = sphi %s2340_s23, %s3120_s23   ;;  %s2235_s22 = sphi %s2338_s22, %s3129_s22   ;;  %s2231_s21 = sphi %s2336_s21, %s3118_s21   ;;  %s2227_s20 = sphi %s2334_s20, %s3117_s20   ;;  %s2223_s19 = sphi %s2332_s19, %s3128_s19   ;;  %s2219_s18 = sphi %s2330_s18, %s3127_s18   ;;  %s2215_s17 = sphi %s2328_s17, %s3126_s17   ;;  %s2211_s16 = sphi %s2326_s16, %s3125_s16   ;;  %s2207_s0 = sphi %s2324_s0, %s3124_s0   ;;  %s2203_s15 = sphi %s2322_s15, %s3123_s15   ;;  %s2199_s14 = sphi %s2320_s14, %s3122_s14   ;;  %s2195_s13 = sphi %s2318_s13, %s3114_s13   ;;  %s2191_s12 = sphi %s2316_s12, %s3113_s12   ;;  %s2187_s11 = sphi %s2314_s11, %s3112_s11  }
  0x1c   : > { %3046 = sst [smem:[#allocation26_spill]] %s2191_s12  ;;  %p76_p3 = scmp.ne.s32.totalorder %s2215_s17, %s2211_s16 }
  0x1d   : > { %3047 = sst [smem:[#allocation27_spill]] %s2195_s13  ;;  %p3020_p4 = scmp.eq.s32.totalorder %s2391_s26, 0 }
  0x1e   : > { %3048 = sst [smem:[#allocation28_spill]] %s2223_s19  ;;  %s1453_s27 = sadd.s32 4294967294, %s2247_s25  }
  0x1f   : > { %3049 = sst [smem:[#allocation29_spill]] %s2227_s20  ;;  %p102_p5 = scmp.ne.s32.totalorder %s2203_s15, %s2199_s14 }
  0x20   : > { %3050 = sst [smem:[#allocation30_spill]] %s2231_s21  ;;  %p2399_p6 = por %p3020_p4, %p76_p3 }
  0x21   : > { %3051 = sst [smem:[#allocation31_spill]] %s2239_s23  ;;  %p211_p7 = scmp.ne.s32.totalorder %s2195_s13, %s2191_s12 }
  0x22   : > { %3052 = sst [smem:[#allocation32_spill]] %s2243_s24  ;;  %p2407_p8 = por %p102_p5, %p3020_p4 }
  0x23   : > { %s3053_s28 = scalar_select %p2399_p6, 1, 0 }
  0x24   : > { %s3054_s29 = scalar_select %p2407_p8, 1, 0 }
  0x25   : > { %p212_p9 = scmp.eq.s32.totalorder %s2391_s26, 7  ;;  %p217_p10 = scmp.ne.s32.totalorder %s2191_s12, %s2187_s11 }
  0x26   : > { %p218_p11 = scmp.eq.s32.totalorder %s1453_s27, 7  ;;  %p1454_p13 = scmp.ge.s32.totalorder %s2247_s25, 1 }
  0x27   : > { %p2414_p12 = por %p212_p9, %p211_p7  ;;  %p225_p1 = scmp.lt.s32.totalorder %s2247_s25, 9 }
  0x28   : > { %p2419_p0 = por %p218_p11, %p217_p10  ;;  %s2250_s10 = smov [#allocation13]  }
  0x29   : > { %s3055_s30 = scalar_select %p2414_p12, 1, 0 }
  0x2a   : > { %s3057_s8 = scalar_select %p2419_p0, 1, 0 }
  0x2b   : > { %3056 = sst [smem:[#allocation33_spill]] %s3055_s30  ;;  %p2424_p2 = pnand %p1454_p13, %p225_p1 }
  0x2c   : > { %3058 = sst [smem:[#allocation34_spill]] %s3057_s8  ;;  %s237_s14 = sshll.u32 %s2250_s10, 4  ;;  %s238_s14 = int_to_ptr.vmem [resolvable:$true] %s237_s14 }
  0x2d   : > { %s3059_s9 = scalar_select %p2424_p2, 1, 0 }
  0x2e   : > { %p1781_p3 = pneg %p2424_p2  ;;  %s2251_s27 = smov [#allocation14]  }
  0x2f   : > { %s253_s8 = sshll.u32 %s2251_s27, 4  ;;  %s3061_s3 = sld [smem:[#allocation41_spill]]  ;;  %s2436_s8 = int_to_ptr.vmem [resolvable:$true] %s253_s8 }
  0x30   : > { %p2432_p5 = pnand %p1781_p3, %p3020_p4 }
  0x32   : > { %p1957_p9 = pneg %p2432_p5 }
  0x35   : > { %s1955_s30 = scalar_lea.hbm %s3061_s3, 2048 }
  0x36   : > { %p1956_p7 = scmp.ne.s32.totalorder %s3061_s3, %s1955_s30  ;;  %p1962_p13 = scmp.lt.u32.totalorder %s1955_s30, %s3061_s3 }
  0x38   : > { %p1958_p10 = pnand %p1957_p9, %p1956_p7 }
  0x3a   : > { %p1959_p11 = pneg %p1958_p10 }
  0x3c   : > { %p1964_p1 = pnand %p1962_p13, %p1959_p11 }
  0x3e   : > { %1967 = shalt.err (!%p1964_p1)
}
  0x3f   : > { %s1968_s27 = scalar_lea.vmem %s238_s14, 2048  ;;  %p1976_p12 = scmp.lt.s32.totalorder %s238_s14, %s238_s14 }
  0x40   : > { %p1969_p3 = scmp.ne.s32.totalorder %s238_s14, %s1968_s27  ;;  %p1977_p8 = scmp.lt.s32.totalorder %s1968_s27, %s1968_s27 }
  0x42   : > { %p1971_p4 = pnand %p1969_p3, %p1957_p9  ;;  %p1978_p6 = por %p1977_p8, %p1976_p12 }
  0x44   : > { %p1972_p0 = pneg %p1971_p4 }
  0x46   : > { %p1979_p2 = pnand %p1978_p6, %p1972_p0 }
  0x48   : > { %1982 = shalt.err (!%p1979_p2)
}
  0x49   : > { %s3030_s6 = smov 128   ;;  %s3029_s7 = smov 8  }
  0x4a   : > { %1784 = dma.hbm_to_vmem [thread:$0]  (!%p2432_p5), %s3061_s3, 2048, %s238_s14, [#allocation12], %s3030_s6, %s3030_s6, %s3029_s7  }
  0x4b   : > { %s3062_s5 = sld [smem:[#allocation43_spill]] }
  0x51   : > { %s1983_s10 = scalar_lea.hbm %s3062_s5, 2048 }
  0x52   : > { %p1984_p4 = scmp.ne.s32.totalorder %s3062_s5, %s1983_s10  ;;  %p1990_p12 = scmp.lt.u32.totalorder %s1983_s10, %s3062_s5 }
  0x54   : > { %p1986_p6 = pnand %p1984_p4, %p1957_p9 }
  0x56   : > { %p1987_p8 = pneg %p1986_p6 }
  0x58   : > { %p1992_p0 = pnand %p1990_p12, %p1987_p8 }
  0x5a   : > { %1995 = shalt.err (!%p1992_p0)
}
  0x5b   : > { %s1996_s14 = scalar_lea.vmem %s2436_s8, 2048  ;;  %p2004_p11 = scmp.lt.s32.totalorder %s2436_s8, %s2436_s8 }
  0x5c   : > { %p1997_p2 = scmp.ne.s32.totalorder %s2436_s8, %s1996_s14  ;;  %p2005_p13 = scmp.lt.s32.totalorder %s1996_s14, %s1996_s14 }
  0x5e   : > { %p1999_p7 = pnand %p1997_p2, %p1957_p9  ;;  %p2006_p1 = por %p2005_p13, %p2004_p11 }
  0x60   : > { %p2000_p10 = pneg %p1999_p7 }
  0x62   : > { %p2007_p3 = pnand %p2006_p1, %p2000_p10 }
  0x64   : > { %2010 = shalt.err (!%p2007_p3)
}
  0x65   : > { %1787 = dma.hbm_to_vmem [thread:$0]  (!%p2432_p5), %s3062_s5, 2048, %s2436_s8, [#allocation15], %s3030_s6, %s3030_s6, %s3029_s7  }
  0x66   : > { %s43_s16 = sadd.s32 1, %s2235_s22  ;;  %s46_s4 = sadd.s32 1, %s2239_s23 }
  0x67   : > { %p44_p9 = scmp.ge.s32.totalorder %s43_s16, 2  ;;  %s50_s11 = sadd.s32 1, %s2243_s24 }
  0x68   : > { %s2496_s21 = sld [smem:[#allocation7 + %s2243_s24]]  ;;  %p70_p4 = scmp.ne.s32.totalorder %s2219_s18, %s2215_s17 }
  0x69   : > { %s3131_s16 = smov (%p44_p9, %s43_s16), 0  ;;  %s3133_s4 = smov (!%p44_p9, %s46_s4), %s2239_s23 }
  0x6a   : > { %3063 = sst [smem:[#allocation35_spill]] %s3131_s16  ;;  %s2503_s30 = ssub.s32 %s2235_s22, %s3131_s16 }
  0x6b   : > { %p48_p5 = scmp.ge.s32.totalorder %s3133_s4, 2  ;;  %p71_p6 = scmp.eq.s32.totalorder %s2247_s25, 0 }
  0x6c   : > { %p87_p8 = scmp.eq.s32.totalorder %s2503_s30, 0  ;;  %p3039_p12 = scmp.lt.s32.totalorder %s2247_s25, 8 }
  0x6d   : > { %s3135_s4 = smov (%p48_p5, %s3133_s4), 0  ;;  %s3137_s11 = smov (!%p48_p5, %s50_s11), %s2243_s24 }
  0x6e   : > { %3064 = sst [smem:[#allocation36_spill]] %s3135_s4  ;;  %s57_s10 = ssub.s32 %s2239_s23, %s3135_s4 }
  0x6f   : > { %p52_p0 = scmp.ge.s32.totalorder %s3137_s11, 2  ;;  %s3032_s27 = sand.u32 1, %s2219_s18  }
  0x70   : > { %p2519_p2 = por %p71_p6, %p70_p4  ;;  %s1458_s12 = sshll.u32 %s3032_s27, 6 }
  0x71   : > { %s3139_s11 = smov (%p52_p0, %s3137_s11), 0  ;;  %s1507_s8 = sshll.u32 %s2239_s23, 5 }
  0x72   : > { %3066 = sst [smem:[#allocation37_spill]] %s3139_s11  ;;  %s196_s7 = ssub.s32 %s2243_s24, %s3139_s11 }
  0x73   : > { %s55_s19 = sld [smem:[#allocation7 + %s3139_s11]]  ;;  %s198_s6 = sor.u32 %s196_s7, %s57_s10 }
  0x74   : > { %p199_p7 = scmp.eq.s32.totalorder %s198_s6, 0  ;;  %s274_s20 = scalar_lea.vmem [#allocation8], %s1458_s12 }
  0x75   : > { %s286_s3 = sshll.u32 %s274_s20, 4  ;;  %s3067_s5 = sadd.s32 1, %s2195_s13  ;;  %s2552_s3 = int_to_ptr.vmem [resolvable:$true] %s286_s3 }
  0x76   : > { %s1769_s27 = scalar_select %p2519_p2, [#allocation7], [#allocation17] }
  0x77   : > { %s2536_s4 = scalar_select %p199_p7, %s2195_s13, %s3067_s5  }
  0x78   : > { %s1770_s7 = scalar_select %p2519_p2, %s2243_s24, 0 }
  0x79   : > { %3068 = sst [smem:[#allocation38_spill]] %s2536_s4  ;;  %s56_s11 = ssub.s32 %s2496_s21, %s55_s19 }
  0x7a   : > { %s281_s16 = sadd.s32 %s2235_s22, %s1507_s8  ;;  %s58_s6 = sor.u32 %s57_s10, %s56_s11 }
  0x7b   : > { %p2547_p10 = pnand %p3039_p12, %p2519_p2  ;;  %s60_s12 = sor.u32 %s2503_s30, %s58_s6 }
  0x7c   : > { %p61_p11 = scmp.eq.s32.totalorder %s60_s12, 0  ;;  %s3141_s27 = smov (!%p3039_p12, %s1769_s27), [#allocation18] }
  0x7d   : > { %s3070_s5 = sadd.s32 1, %s2219_s18  ;;  %s3143_s7 = smov (!%p3039_p12, %s1770_s7), 0 }
  0x7e   : > { %s2559_s24 = scalar_select %p61_p11, %s2219_s18, %s3070_s5  }
  0x7f   : > { %s275_s21 = sld [smem:[%s3141_s27 + %s3143_s7]]  ;;  %s89_s11 = sadd.s32 1, %s2207_s0 }
  0x80   : > { %3071 = sst [smem:[#allocation39_spill]] %s2559_s24  ;;  %p96_p13 = scmp.ne.s32.totalorder %s2207_s0, %s2203_s15 }
  0x81   : > { %s2569_s8 = scalar_select %p87_p8, %s2207_s0, %s89_s11  }
  0x82   : > { %p2573_p1 = por %p96_p13, %p71_p6  ;;  %s296_s14 = sand.u32 1, %s2247_s25  }
  0x83   : > { %3072 = sst [smem:[#allocation40_spill]] %s2569_s8  ;;  %s298_s19 = sand.u32 1, %s2207_s0  }
  0x84   : > { %s1463_s6 = sshll.u32 %s298_s19, 7  ;;  %s1508_s12 = sshll.u32 %s2235_s22, 11 }
  0x85   : > { %s1461_s5 = sshll.u32 %s275_s21, 6  ;;  %s300_s7 = scalar_lea.vmem [#allocation11], %s1463_s6 }
  0x86   : > { %s283_s23 = sadd.s32 %s1461_s5, %s281_s16  ;;  %s2580_s24 = sshll.u32 %s300_s7, 4  ;;  %s2624_s24 = int_to_ptr.vmem [resolvable:$true] %s2580_s24 }
  0x87   : > { %s1462_s27 = sshll.u32 %s283_s23, 6  ;;  %s2590_s19 = scalar_lea.hbm %s3007_s2, %s1508_s12 }
  0x88   : > { %s2585_s8 = scalar_lea.hbm %s3006_s1, %s1462_s27  ;;  %s3074_s21 = sand.u32 1, %s2219_s18  }
  0x89   : > { %s2594_s16 = scalar_lea.sflag [#allocation9], %s3074_s21  ;;  %s2011_s23 = scalar_lea.hbm %s2585_s8, 1024 }
  0x8a   : > { %p2012_p3 = scmp.ne.s32.totalorder %s2585_s8, %s2011_s23  ;;  %p2013_p9 = pneg %p2547_p10 }
  0x8b   : > { %s2016_s13 = scalar_lea.hbm %s3006_s1, 8192  ;;  %p2017_p6 = scmp.lt.u32.totalorder %s2585_s8, %s3006_s1 }
  0x8c   : > { %p2014_p5 = pnand %p2013_p9, %p2012_p3  ;;  %p2018_p8 = scmp.lt.u32.totalorder %s2016_s13, %s2011_s23 }
  0x8d   : > { %p2020_p2 = scmp.lt.u32.totalorder %s2011_s23, %s2585_s8 }
  0x8e   : > { %p2015_p4 = pneg %p2014_p5  ;;  %p2019_p0 = por %p2018_p8, %p2017_p6 }
  0x90   : > { %p2021_p7 = por %p2020_p2, %p2019_p0 }
  0x92   : > { %p2022_p11 = pnand %p2021_p7, %p2015_p4 }
  0x94   : > { %2025 = shalt.err (!%p2022_p11)
}
  0x95   : > { %s2026_s12 = scalar_lea.vmem %s2552_s3, 1024  ;;  %s2254_s7 = smov [#allocation8]  }
  0x96   : > { %p2027_p13 = scmp.ne.s32.totalorder %s2552_s3, %s2026_s12  ;;  %s2031_s30 = sshll.u32 %s2254_s7, 4  ;;  %s2032_s30 = int_to_ptr.vmem [resolvable:$false] %s2031_s30 }
  0x97   : > { %s2033_s11 = scalar_lea.vmem %s2032_s30, 2048  ;;  %p2034_p12 = scmp.lt.s32.totalorder %s2552_s3, %s2032_s30 }
  0x98   : > { %p2029_p3 = pnand %p2027_p13, %p2013_p9  ;;  %p2035_p6 = scmp.lt.s32.totalorder %s2033_s11, %s2026_s12 }
  0x9a   : > { %p2030_p5 = pneg %p2029_p3  ;;  %p2036_p8 = por %p2035_p6, %p2034_p12 }
  0x9c   : > { %p2037_p0 = pnand %p2036_p8, %p2030_p5 }
  0x9e   : > { %2040 = shalt.err (!%p2037_p0)
}
  0x9f   : > { %s2255_s21 = smov 64   ;;  %s2256_s23 = smov 4  }
  0xa0   : > { %s3075_s6 = smov 128   ;;  %p3076_p12 = scmp.lt.s32.totalorder %s2247_s25, 8 }
  0xa1   : > { %1793 = dma.hbm_to_vmem [thread:$0]  (!%p2547_p10), %s2585_s8, 1024, %s2552_s3, %s2594_s16, %s3075_s6, %s2255_s21, %s2256_s23  }
  0xa2   : > { %p2630_p9 = pnand %p3076_p12, %p2573_p1  ;;  %s2636_s13 = scalar_lea.sflag [#allocation12], %s296_s14 }
  0xa3   : > { %s2041_s4 = scalar_lea.hbm %s2590_s19, 2048  ;;  %s2046_s8 = scalar_lea.hbm %s3007_s2, 4096 }
  0xa4   : > { %p2042_p4 = scmp.ne.s32.totalorder %s2590_s19, %s2041_s4  ;;  %p2043_p2 = pneg %p2630_p9 }
  0xa5   : > { %p2047_p1 = scmp.lt.u32.totalorder %s2590_s19, %s3007_s2  ;;  %p2048_p11 = scmp.lt.u32.totalorder %s2046_s8, %s2041_s4 }
  0xa6   : > { %p2044_p10 = pnand %p2043_p2, %p2042_p4  ;;  %p2050_p3 = scmp.lt.u32.totalorder %s2041_s4, %s2590_s19 }
  0xa7   : > { %p2049_p13 = por %p2048_p11, %p2047_p1 }
  0xa8   : > { %p2045_p7 = pneg %p2044_p10 }
  0xa9   : > { %p2051_p5 = por %p2050_p3, %p2049_p13 }
  0xab   : > { %p2052_p6 = pnand %p2051_p5, %p2045_p7 }
  0xad   : > { %2055 = shalt.err (!%p2052_p6)
}
  0xae   : > { %s2056_s14 = scalar_lea.vmem %s2624_s24, 2048  ;;  %s2257_s27 = smov [#allocation11]  }
  0xaf   : > { %p2057_p8 = scmp.ne.s32.totalorder %s2624_s24, %s2056_s14  ;;  %s2061_s12 = sshll.u32 %s2257_s27, 4  ;;  %s2062_s12 = int_to_ptr.vmem [resolvable:$false] %s2061_s12 }
  0xb0   : > { %s2063_s7 = scalar_lea.vmem %s2062_s12, 4096  ;;  %p2064_p4 = scmp.lt.s32.totalorder %s2624_s24, %s2062_s12 }
  0xb1   : > { %p2059_p0 = pnand %p2057_p8, %p2043_p2  ;;  %p2065_p10 = scmp.lt.s32.totalorder %s2063_s7, %s2056_s14 }
  0xb3   : > { %p2060_p12 = pneg %p2059_p0  ;;  %p2066_p1 = por %p2065_p10, %p2064_p4 }
  0xb5   : > { %p2067_p11 = pnand %p2066_p1, %p2060_p12 }
  0xb7   : > { %2070 = shalt.err (!%p2067_p11)
}
  0xb8   : > { %s3078_s30 = smov 8   ;;  %p3079_p2 = scmp.ne.s32.totalorder %s3059_s9, 0 }
  0xb9   : > { %1796 = dma.hbm_to_vmem [thread:$0]  (!%p2630_p9), %s2590_s19, 2048, %s2624_s24, %s2636_s13, %s3075_s6, %s3075_s6, %s3078_s30  }
  0xba   : > { %319 = sbr.rel (%p3079_p2) target bundleno = 1375 (0x55f), region = 44  ;;  %s321_s11 = sand.u32 (!%p3079_p2), 1, %s2215_s17  }
  0xbb   : > { %s1467_s21 = sshll.u32 (!%p3079_p2), %s321_s11, 6  ;;  %s322_s23 = scalar_lea.sflag (!%p3079_p2), [#allocation9], %s321_s11 }
  0xbc   : > { %s2670_s4 = scalar_lea.vmem (!%p3079_p2), [#allocation8], %s1467_s21  ;;  %p3080_p7 = scmp.ne.s32.totalorder (!%p3079_p2), %s3053_s28, 0 }
  0xc1   : > { %2166 = dma.done.wait (%p3080_p7), %s322_s23, 1024  }
  0xc2   : > { %2168 = vsyncadd (%p3080_p7), %s322_s23, 4294966272  ;;  %s330_s5 = sand.u32 1, %s2391_s26   ;;  %s332_s24 = sand.u32 1, %s2203_s15  }
  0xc3   : > { %s1468_s19 = sshll.u32 %s332_s24, 7  ;;  %s331_s9 = scalar_lea.sflag [#allocation12], %s330_s5 }
  0xc4   : > { %s2678_s6 = scalar_lea.vmem [#allocation11], %s1468_s19  ;;  %p3081_p9 = scmp.ne.s32.totalorder %s3054_s29, 0 }
  0xc6   : > { %2170 = dma.done.wait (%p3081_p9), %s331_s9, 2048  }
  0xc7   : > { %2172 = vsyncadd (%p3081_p9), %s331_s9, 4294965248  ;;  %p3082_p13 = scmp.eq.s32.totalorder %s2391_s26, 0 }
  0xc9   : > { %2174 = dma.done.wait (%p3082_p13), [#allocation12], 2048   ;;  %p3083_p3 = pmov %p3082_p13 }
  0xcb   : > { %2176 = vsyncadd (%p3083_p3), [#allocation12], 4294965248  ;;  %p3084_p5 = pmov %p3083_p3 }
  0xcc   : > { %p3085_p6 = pmov %p3083_p3 }
  0xcd   : > { %2178 = dma.done.wait (%p3084_p5), [#allocation15], 2048  }
  0xce   : > { %2180 = vsyncadd (%p3085_p6), [#allocation15], 4294965248  ;;  %s3086_s28 = sld [smem:[#allocation26_spill]]  ;;  %s3087_s13 = sld [smem:[#allocation28_spill]] }
  0xcf   : > { %s3088_s3 = sld [smem:[#allocation29_spill]]  ;;  %s3089_s20 = sld [smem:[#allocation30_spill]] }
  0xd4   : > { %s373_s29 = sand.u32 1, %s3086_s28   ;;  %s2694_s8 = sshll.u32 %s3087_s13, 7 }
  0xd5   : > { %s1471_s10 = sshll.u32 %s373_s29, 7  ;;  %s1473_s16 = sshll.u32 %s3088_s3, 7 }
  0xd6   : > { %p383_p8 = scmp.eq.s32.totalorder %s3089_s20, 0  ;;  %p384_p0 = scmp.eq.s32.totalorder %s3088_s3, 0 }
  0xd7   : > { %s2705_s26 = scalar_lea.vmem [#allocation16], %s1471_s10 }
  0xd8   : > { %p385_p12 = pnand %p384_p0, %p383_p8 }
  0xd9   : > { %v413_v0 = vld [vmem:[#allocation13] sm:$0xff] (!%p385_p12)  ;;  %v414_v1 = vld [vmem:[#allocation13 + $0x8] sm:$0xff] (!%p385_p12)  ;;  %v415_v2 = vld [vmem:[#allocation13 + $0x10] sm:$0xff] (!%p385_p12)  ;;  %s549_s14 = sshra.s32 (!%p385_p12), %s2694_s8, 4  ;;  %s3090_s7 = sld [smem:[#allocation42_spill]] (!%p385_p12) }
  0xda   : > { %388 = sbr.rel (%p385_p12) target bundleno = 480 (0x1e0), region = 64  ;;  %v429_v3 = vpack.c.bf16 (!%p385_p12), %v414_v1, %v413_v0  ;;  %v416_v4 = vld [vmem:[#allocation13 + $0x18] sm:$0xff] (!%p385_p12)  ;;  %v417_v6 = vld [vmem:[#allocation13 + $0x20] sm:$0xff] (!%p385_p12)  ;;  %v418_v7 = vld [vmem:[#allocation13 + $0x28] sm:$0xff] (!%p385_p12)  ;;  %s1475_s30 = sshll.u32 (!%p385_p12), %s549_s14, 3 }
  0xdb   : > { %v430_v5 = vpack.c.bf16 (!%p385_p12), %v416_v4, %v415_v2  ;;  %v431_v8 = vpack.c.bf16 (!%p385_p12), %v418_v7, %v417_v6  ;;  %v419_v9 = vld [vmem:[#allocation13 + $0x30] sm:$0xff] (!%p385_p12)  ;;  %v389_v10 = vld [vmem:[%s2678_s6] sm:$0xff] (!%p385_p12)  ;;  %v390_v11 = vld [vmem:[%s2678_s6 + $0x8] sm:$0xff] (!%p385_p12)  ;;  %s552_s11 = scalar_lea.vmem (!%p385_p12), [#allocation3], %s1475_s30 }
  0xdc   : > { %1573 = vmatprep.subr.bf16.mxu0 (!%p385_p12), %v429_v3  ;;  %1701 = vmatprep.subr.bf16.mxu1 (!%p385_p12), %v429_v3  ;;  %v420_v12 = vld [vmem:[#allocation13 + $0x38] sm:$0xff] (!%p385_p12)  ;;  %v405_v13 = vpack.c.bf16 (!%p385_p12), %v390_v11, %v389_v10  ;;  %v397_v14 = vld [vmem:[%s2678_s6 + $0x40] sm:$0xff] (!%p385_p12)  ;;  %v398_v15 = vld [vmem:[%s2678_s6 + $0x48] sm:$0xff] (!%p385_p12) }
  0xdd   : > { %1574 = vmatpush3.bf16.msra.mxu0 (!%p385_p12), %v429_v3  ;;  %1709 = vmatpush3.bf16.msra.mxu1 (!%p385_p12), %v429_v3  ;;  %v409_v16 = vpack.c.bf16 (!%p385_p12), %v398_v15, %v397_v14  ;;  %v432_v17 = vpack.c.bf16 (!%p385_p12), %v420_v12, %v419_v9  ;;  %v421_v18 = vld [vmem:[#allocation13 + $0x40] sm:$0xff] (!%p385_p12)  ;;  %v422_v19 = vld [vmem:[#allocation13 + $0x48] sm:$0xff] (!%p385_p12)  ;;  %v423_v21 = vld [vmem:[#allocation13 + $0x50] sm:$0xff] (!%p385_p12) }
  0xde   : > { %1575 = vmatprep.subr.bf16.mxu0 (!%p385_p12), %v430_v5  ;;  %1702 = vmatprep.subr.bf16.mxu1 (!%p385_p12), %v430_v5  ;;  %v433_v20 = vpack.c.bf16 (!%p385_p12), %v422_v19, %v421_v18  ;;  %v424_v22 = vld [vmem:[#allocation13 + $0x58] sm:$0xff] (!%p385_p12)  ;;  %v425_v24 = vld [vmem:[#allocation13 + $0x60] sm:$0xff] (!%p385_p12)  ;;  %v426_v25 = vld [vmem:[#allocation13 + $0x68] sm:$0xff] (!%p385_p12) }
  0xdf   : > { %1589 = vmatprep.mubr.bf16.mxu0 (!%p385_p12), %v405_v13  ;;  %1597 = vmatprep.mubr.bf16.mxu1 (!%p385_p12), %v409_v16  ;;  %v434_v23 = vpack.c.bf16 (!%p385_p12), %v424_v22, %v423_v21  ;;  %v435_v26 = vpack.c.bf16 (!%p385_p12), %v426_v25, %v425_v24  ;;  %v427_v27 = vld [vmem:[#allocation13 + $0x70] sm:$0xff] (!%p385_p12)  ;;  %v428_v28 = vld [vmem:[#allocation13 + $0x78] sm:$0xff] (!%p385_p12)  ;;  %v393_v34 = vld [vmem:[%s2678_s6 + $0x20] sm:$0xff] (!%p385_p12) }
  0xe0   : > { %v436_v29 = vpack.c.bf16 (!%p385_p12), %v428_v28, %v427_v27  ;;  %v391_v30 = vld [vmem:[%s2678_s6 + $0x10] sm:$0xff] (!%p385_p12)  ;;  %v392_v31 = vld [vmem:[%s2678_s6 + $0x18] sm:$0xff] (!%p385_p12)  ;;  %v394_v35 = vld [vmem:[%s2678_s6 + $0x28] sm:$0xff] (!%p385_p12) }
  0xe1   : > { %1576 = vmatpush3.bf16.msra.mxu0 %v430_v5  ;;  %1710 = vmatpush3.bf16.msra.mxu1 %v430_v5  ;;  %v399_v32 = vld [vmem:[%s2678_s6 + $0x50] sm:$0xff]  ;;  %v400_v33 = vld [vmem:[%s2678_s6 + $0x58] sm:$0xff]  ;;  %v401_v36 = vld [vmem:[%s2678_s6 + $0x60] sm:$0xff]  ;;  %v406_v38 = vpack.c.bf16 %v392_v31, %v391_v30  ;;  %v407_v40 = vpack.c.bf16 %v394_v35, %v393_v34 }
  0xe2   : > { %1577 = vmatprep.subr.bf16.mxu0 %v431_v8  ;;  %1703 = vmatprep.subr.bf16.mxu1 %v431_v8  ;;  %v402_v37 = vld [vmem:[%s2678_s6 + $0x68] sm:$0xff]  ;;  %v410_v39 = vpack.c.bf16 %v400_v33, %v399_v32  ;;  %v395_v42 = vld [vmem:[%s2678_s6 + $0x30] sm:$0xff]  ;;  %v396_v43 = vld [vmem:[%s2678_s6 + $0x38] sm:$0xff] }
  0xe3   : > { %v411_v41 = vpack.c.bf16 %v402_v37, %v401_v36  ;;  %v403_v44 = vld [vmem:[%s2678_s6 + $0x70] sm:$0xff]  ;;  %v404_v45 = vld [vmem:[%s2678_s6 + $0x78] sm:$0xff]  ;;  %v408_v46 = vpack.c.bf16 %v396_v43, %v395_v42  ;;  %v1474_v49 = vld [vmem:[%s3090_s7] ss:$0 sm:$0xff] }
  0xe4   : > { %v412_v47 = vpack.c.bf16 %v404_v45, %v403_v44 }
  0xe5   : > { %1578 = vmatpush3.bf16.msra.mxu0 %v431_v8  ;;  %1711 = vmatpush3.bf16.msra.mxu1 %v431_v8 }
  0xe6   : > { %1579 = vmatprep.subr.bf16.mxu0 %v432_v17  ;;  %1704 = vmatprep.subr.bf16.mxu1 %v432_v17 }
  0xe9   : > { %1580 = vmatpush3.bf16.msra.mxu0 %v432_v17  ;;  %1712 = vmatpush3.bf16.msra.mxu1 %v432_v17 }
  0xea   : > { %1581 = vmatprep.subr.bf16.mxu0 %v433_v20  ;;  %1705 = vmatprep.subr.bf16.mxu1 %v433_v20 }
  0xed   : > { %1582 = vmatpush3.bf16.msra.mxu0 %v433_v20  ;;  %1713 = vmatpush3.bf16.msra.mxu1 %v433_v20 }
  0xee   : > { %1583 = vmatprep.subr.bf16.mxu0 %v434_v23  ;;  %1706 = vmatprep.subr.bf16.mxu1 %v434_v23 }
  0xf1   : > { %1584 = vmatpush3.bf16.msra.mxu0 %v434_v23  ;;  %1714 = vmatpush3.bf16.msra.mxu1 %v434_v23 }
  0xf2   : > { %1585 = vmatprep.subr.bf16.mxu0 %v435_v26  ;;  %1707 = vmatprep.subr.bf16.mxu1 %v435_v26 }
  0xf5   : > { %1586 = vmatpush3.bf16.msra.mxu0 %v435_v26  ;;  %1715 = vmatpush3.bf16.msra.mxu1 %v435_v26 }
  0xf6   : > { %1587 = vmatprep.subr.bf16.mxu0 %v436_v29  ;;  %1708 = vmatprep.subr.bf16.mxu1 %v436_v29 }
  0xf9   : > { %1588 = vmatpush3.bf16.msra.mxu0 %v436_v29  ;;  %1716 = vmatpush3.bf16.msra.mxu1 %v436_v29 }
  0xfc   : > { %1590 = vmatmul.mubr.bf16.vlgmr.msra.gmra.mrb[0].mxu0 %v406_v38  ;;  %1598 = vmatmul.mubr.bf16.vlgmr.msra.gmra.mrb[0].mxu1 %v410_v39 }
  0xfd   : > { %1593 = vmatprep.mubr.bf16.mxu0 %v407_v40  ;;  %1601 = vmatprep.mubr.bf16.mxu1 %v411_v41 }
 0x104   : > { %1594 = vmatmul.mubr.bf16.gmra.mrb[4].mxu0 %v408_v46  ;;  %1602 = vmatmul.mubr.bf16.gmra.mrb[4].mxu1 %v412_v47 }
 0x1cf   : > { %v1591_v48 = vpop.f32.mrb[0].mxu0  ;;  %v1599_v50 = vpop.f32.mrb[0].mxu1 }
 0x1d0   : > { %v478_v51 = vpop.f32.mrb[1].mxu0  ;;  %v510_v52 = vpop.f32.mrb[1].mxu1  ;;  %v487_v55 = vadd.f32 %v1591_v48, %v1474_v49  ;;  %v519_v56 = vadd.f32 %v1599_v50, %v1474_v49 }
 0x1d1   : > { %v1592_v53 = vpop.f32.mrb[2].mxu0  ;;  %v1600_v54 = vpop.f32.mrb[2].mxu1  ;;  %v479_v61 = vadd.f32 %v1474_v49, %v478_v51  ;;  %v511_v62 = vadd.f32 %v1474_v49, %v510_v52 }
 0x1d2   : > { %v490_v57 = vadd.f32 %v1592_v53, %v1474_v49  ;;  %v522_v58 = vadd.f32 %v1600_v54, %v1474_v49  ;;  %v481_v59 = vpop.f32.mrb[3].mxu0  ;;  %v513_v60 = vpop.f32.mrb[3].mxu1 }
 0x1d3   : > { %v482_v63 = vadd.f32 %v1474_v49, %v481_v59  ;;  %v514_v0 = vadd.f32 %v1474_v49, %v513_v60 }
 0x1d4   : > { %v542_v1 = vpack.c.bf16 %v490_v57, %v487_v55  ;;  %v546_v2 = vpack.c.bf16 %v522_v58, %v519_v56 }
 0x1d5   : > { %v541_v3 = vpack.c.bf16 %v482_v63, %v479_v61  ;;  %v545_v4 = vpack.c.bf16 %v514_v0, %v511_v62 }
 0x1d6   : > { %554 = vst [vmem:[%s552_s11 + $0x8] sm:$0xff] %v542_v1  ;;  %558 = vst [vmem:[%s552_s11 + $0x28] sm:$0xff] %v546_v2 }
 0x1d7   : > { %553 = vst [vmem:[%s552_s11] sm:$0xff] %v541_v3  ;;  %557 = vst [vmem:[%s552_s11 + $0x20] sm:$0xff] %v545_v4  ;;  %v1595_v5 = vpop.f32.mrb[4].mxu0  ;;  %v1603_v6 = vpop.f32.mrb[4].mxu1 }
 0x1d8   : > { %v494_v7 = vpop.f32.mrb[5].mxu0  ;;  %v526_v8 = vpop.f32.mrb[5].mxu1  ;;  %v503_v11 = vadd.f32 %v1595_v5, %v1474_v49  ;;  %v535_v12 = vadd.f32 %v1603_v6, %v1474_v49 }
 0x1d9   : > { %v1596_v9 = vpop.f32.mrb[6].mxu0  ;;  %v1604_v10 = vpop.f32.mrb[6].mxu1  ;;  %v495_v17 = vadd.f32 %v1474_v49, %v494_v7  ;;  %v527_v18 = vadd.f32 %v1474_v49, %v526_v8 }
 0x1da   : > { %v506_v13 = vadd.f32 %v1596_v9, %v1474_v49  ;;  %v538_v14 = vadd.f32 %v1604_v10, %v1474_v49  ;;  %v497_v15 = vpop.f32.mrb[7].mxu0  ;;  %v529_v16 = vpop.f32.mrb[7].mxu1 }
 0x1db   : > { %v498_v19 = vadd.f32 %v1474_v49, %v497_v15  ;;  %v530_v20 = vadd.f32 %v1474_v49, %v529_v16 }
 0x1dc   : > { %v544_v21 = vpack.c.bf16 %v506_v13, %v503_v11  ;;  %v548_v22 = vpack.c.bf16 %v538_v14, %v535_v12 }
 0x1dd   : > { %v543_v23 = vpack.c.bf16 %v498_v19, %v495_v17  ;;  %v547_v24 = vpack.c.bf16 %v530_v20, %v527_v18 }
 0x1de   : > { %556 = vst [vmem:[%s552_s11 + $0x18] sm:$0xff] %v544_v21  ;;  %560 = vst [vmem:[%s552_s11 + $0x38] sm:$0xff] %v548_v22 }
 0x1df   : > { %555 = vst [vmem:[%s552_s11 + $0x10] sm:$0xff] %v543_v23  ;;  %559 = vst [vmem:[%s552_s11 + $0x30] sm:$0xff] %v547_v24 }
 0x1e0 PF: > { %s3091_s21 = sld [smem:[#allocation30_spill]] }
 0x1e6   : > { %p561_p4 = scmp.eq.s32.totalorder %s3091_s21, 1 }
 0x1e8   : > { %p562_p10 = pnand %p561_p4, %p384_p0 }
 0x1e9   : > { %v578_v25 = vld [vmem:[#allocation14] sm:$0xff] (!%p562_p10)  ;;  %v579_v26 = vld [vmem:[#allocation14 + $0x8] sm:$0xff] (!%p562_p10)  ;;  %v580_v27 = vld [vmem:[#allocation14 + $0x10] sm:$0xff] (!%p562_p10)  ;;  %s566_s5 = sshra.s32 (!%p562_p10), %s2694_s8, 4  ;;  %s3093_s28 = sld [smem:[#allocation44_spill]] (!%p562_p10) }
 0x1ea   : > { %565 = sbr.rel (%p562_p10) target bundleno = 752 (0x2f0), region = 68  ;;  %v594_v28 = vpack.c.bf16 (!%p562_p10), %v579_v26, %v578_v25  ;;  %v581_v29 = vld [vmem:[#allocation14 + $0x18] sm:$0xff] (!%p562_p10)  ;;  %s2733_s24 = sshll.u32 (!%p562_p10), %s566_s5, 3  ;;  %v582_v31 = vld [vmem:[#allocation14 + $0x20] sm:$0xff] (!%p562_p10)  ;;  %v583_v32 = vld [vmem:[#allocation14 + $0x28] sm:$0xff] (!%p562_p10) }
 0x1eb   : > { %v595_v30 = vpack.c.bf16 (!%p562_p10), %v581_v29, %v580_v27  ;;  %v596_v33 = vpack.c.bf16 (!%p562_p10), %v583_v32, %v582_v31  ;;  %s2736_s19 = scalar_lea.vmem (!%p562_p10), [#allocation4], %s2733_s24  ;;  %v584_v36 = vld [vmem:[#allocation14 + $0x30] sm:$0xff] (!%p562_p10)  ;;  %v585_v37 = vld [vmem:[#allocation14 + $0x38] sm:$0xff] (!%p562_p10)  ;;  %v586_v39 = vld [vmem:[#allocation14 + $0x40] sm:$0xff] (!%p562_p10)  ;;  %s715_s13 = scalar_lea.vmem (!%p562_p10), [#allocation5], %s2733_s24 }
 0x1ec   : > { %1605 = vmatprep.subr.bf16.mxu0 (!%p562_p10), %v594_v28  ;;  %1717 = vmatprep.subr.bf16.mxu1 (!%p562_p10), %v594_v28  ;;  %v570_v34 = vld [vmem:[%s2736_s19] sm:$0xff] (!%p562_p10)  ;;  %v597_v38 = vpack.c.bf16 (!%p562_p10), %v585_v37, %v584_v36  ;;  %v587_v40 = vld [vmem:[#allocation14 + $0x48] sm:$0xff] (!%p562_p10)  ;;  %v588_v42 = vld [vmem:[#allocation14 + $0x50] sm:$0xff] (!%p562_p10) }
 0x1ed   : > { %1606 = vmatpush3.bf16.msra.mxu0 (!%p562_p10), %v594_v28  ;;  %1725 = vmatpush3.bf16.msra.mxu1 (!%p562_p10), %v594_v28  ;;  %v574_v35 = vld [vmem:[%s2736_s19 + $0x20] sm:$0xff] (!%p562_p10)  ;;  %v598_v41 = vpack.c.bf16 (!%p562_p10), %v587_v40, %v586_v39  ;;  %v589_v43 = vld [vmem:[#allocation14 + $0x58] sm:$0xff] (!%p562_p10)  ;;  %v591_v46 = vld [vmem:[#allocation14 + $0x68] sm:$0xff] (!%p562_p10) }
 0x1ee   : > { %1607 = vmatprep.subr.bf16.mxu0 (!%p562_p10), %v595_v30  ;;  %1718 = vmatprep.subr.bf16.mxu1 (!%p562_p10), %v595_v30  ;;  %v599_v44 = vpack.c.bf16 (!%p562_p10), %v589_v43, %v588_v42  ;;  %v590_v45 = vld [vmem:[#allocation14 + $0x60] sm:$0xff] (!%p562_p10)  ;;  %v592_v48 = vld [vmem:[#allocation14 + $0x70] sm:$0xff] (!%p562_p10)  ;;  %v593_v49 = vld [vmem:[#allocation14 + $0x78] sm:$0xff] (!%p562_p10) }
 0x1ef   : > { %1621 = vmatprep.mubr.bf16.mxu0 (!%p562_p10), %v570_v34  ;;  %1629 = vmatprep.mubr.bf16.mxu1 (!%p562_p10), %v574_v35  ;;  %v600_v47 = vpack.c.bf16 (!%p562_p10), %v591_v46, %v590_v45  ;;  %v601_v50 = vpack.c.bf16 (!%p562_p10), %v593_v49, %v592_v48  ;;  %v571_v51 = vld [vmem:[%s2736_s19 + $0x8] sm:$0xff] (!%p562_p10)  ;;  %v572_v53 = vld [vmem:[%s2736_s19 + $0x10] sm:$0xff] (!%p562_p10)  ;;  %v573_v55 = vld [vmem:[%s2736_s19 + $0x18] sm:$0xff] (!%p562_p10) }
 0x1f0   : > { %v575_v52 = vld [vmem:[%s2736_s19 + $0x28] sm:$0xff] (!%p562_p10)  ;;  %v576_v54 = vld [vmem:[%s2736_s19 + $0x30] sm:$0xff] (!%p562_p10)  ;;  %v577_v56 = vld [vmem:[%s2736_s19 + $0x38] sm:$0xff] (!%p562_p10) }
 0x1f1   : > { %1608 = vmatpush3.bf16.msra.mxu0 %v595_v30  ;;  %1726 = vmatpush3.bf16.msra.mxu1 %v595_v30  ;;  %v1477_v58 = vld [vmem:[%s3093_s28] ss:$0 sm:$0xff] }
 0x1f2   : > { %1609 = vmatprep.subr.bf16.mxu0 %v596_v33  ;;  %1719 = vmatprep.subr.bf16.mxu1 %v596_v33 }
 0x1f5   : > { %1610 = vmatpush3.bf16.msra.mxu0 %v596_v33  ;;  %1727 = vmatpush3.bf16.msra.mxu1 %v596_v33 }
 0x1f6   : > { %1611 = vmatprep.subr.bf16.mxu0 %v597_v38  ;;  %1720 = vmatprep.subr.bf16.mxu1 %v597_v38 }
 0x1f9   : > { %1612 = vmatpush3.bf16.msra.mxu0 %v597_v38  ;;  %1728 = vmatpush3.bf16.msra.mxu1 %v597_v38 }
 0x1fa   : > { %1613 = vmatprep.subr.bf16.mxu0 %v598_v41  ;;  %1721 = vmatprep.subr.bf16.mxu1 %v598_v41 }
 0x1fd   : > { %1614 = vmatpush3.bf16.msra.mxu0 %v598_v41  ;;  %1729 = vmatpush3.bf16.msra.mxu1 %v598_v41 }
 0x1fe   : > { %1615 = vmatprep.subr.bf16.mxu0 %v599_v44  ;;  %1722 = vmatprep.subr.bf16.mxu1 %v599_v44 }
 0x201   : > { %1616 = vmatpush3.bf16.msra.mxu0 %v599_v44  ;;  %1730 = vmatpush3.bf16.msra.mxu1 %v599_v44 }
 0x202   : > { %1617 = vmatprep.subr.bf16.mxu0 %v600_v47  ;;  %1723 = vmatprep.subr.bf16.mxu1 %v600_v47 }
 0x205   : > { %1618 = vmatpush3.bf16.msra.mxu0 %v600_v47  ;;  %1731 = vmatpush3.bf16.msra.mxu1 %v600_v47 }
 0x206   : > { %1619 = vmatprep.subr.bf16.mxu0 %v601_v50  ;;  %1724 = vmatprep.subr.bf16.mxu1 %v601_v50 }
 0x209   : > { %1620 = vmatpush3.bf16.msra.mxu0 %v601_v50  ;;  %1732 = vmatpush3.bf16.msra.mxu1 %v601_v50 }
 0x20c   : > { %1622 = vmatmul.mubr.bf16.vlgmr.msra.gmra.mrb[0].mxu0 %v571_v51  ;;  %1630 = vmatmul.mubr.bf16.vlgmr.msra.gmra.mrb[0].mxu1 %v575_v52 }
 0x20d   : > { %1625 = vmatprep.mubr.bf16.mxu0 %v572_v53  ;;  %1633 = vmatprep.mubr.bf16.mxu1 %v576_v54 }
 0x214   : > { %1626 = vmatmul.mubr.bf16.gmra.mrb[4].mxu0 %v573_v55  ;;  %1634 = vmatmul.mubr.bf16.gmra.mrb[4].mxu1 %v577_v56 }
 0x2df   : > { %v1623_v57 = vpop.f32.mrb[0].mxu0  ;;  %v1631_v59 = vpop.f32.mrb[0].mxu1 }
 0x2e0   : > { %v643_v60 = vpop.f32.mrb[1].mxu0  ;;  %v675_v61 = vpop.f32.mrb[1].mxu1  ;;  %v652_v0 = vadd.f32 %v1623_v57, %v1477_v58  ;;  %v684_v1 = vadd.f32 %v1631_v59, %v1477_v58 }
 0x2e1   : > { %v1624_v62 = vpop.f32.mrb[2].mxu0  ;;  %v1632_v63 = vpop.f32.mrb[2].mxu1  ;;  %v644_v6 = vadd.f32 %v1477_v58, %v643_v60  ;;  %v676_v7 = vadd.f32 %v1477_v58, %v675_v61 }
 0x2e2   : > { %v655_v2 = vadd.f32 %v1624_v62, %v1477_v58  ;;  %v687_v3 = vadd.f32 %v1632_v63, %v1477_v58  ;;  %v646_v4 = vpop.f32.mrb[3].mxu0  ;;  %v678_v5 = vpop.f32.mrb[3].mxu1 }
 0x2e3   : > { %v647_v8 = vadd.f32 %v1477_v58, %v646_v4  ;;  %v679_v9 = vadd.f32 %v1477_v58, %v678_v5 }
 0x2e4   : > { %v707_v10 = vpack.c.bf16 %v655_v2, %v652_v0  ;;  %v711_v11 = vpack.c.bf16 %v687_v3, %v684_v1 }
 0x2e5   : > { %v706_v12 = vpack.c.bf16 %v647_v8, %v644_v6  ;;  %v710_v13 = vpack.c.bf16 %v679_v9, %v676_v7 }
 0x2e6   : > { %717 = vst [vmem:[%s715_s13 + $0x8] sm:$0xff] %v707_v10  ;;  %721 = vst [vmem:[%s715_s13 + $0x28] sm:$0xff] %v711_v11 }
 0x2e7   : > { %716 = vst [vmem:[%s715_s13] sm:$0xff] %v706_v12  ;;  %720 = vst [vmem:[%s715_s13 + $0x20] sm:$0xff] %v710_v13  ;;  %v1627_v14 = vpop.f32.mrb[4].mxu0  ;;  %v1635_v15 = vpop.f32.mrb[4].mxu1 }
 0x2e8   : > { %v659_v16 = vpop.f32.mrb[5].mxu0  ;;  %v691_v17 = vpop.f32.mrb[5].mxu1  ;;  %v668_v20 = vadd.f32 %v1627_v14, %v1477_v58  ;;  %v700_v21 = vadd.f32 %v1635_v15, %v1477_v58 }
 0x2e9   : > { %v1628_v18 = vpop.f32.mrb[6].mxu0  ;;  %v1636_v19 = vpop.f32.mrb[6].mxu1  ;;  %v660_v26 = vadd.f32 %v1477_v58, %v659_v16  ;;  %v692_v27 = vadd.f32 %v1477_v58, %v691_v17 }
 0x2ea   : > { %v671_v22 = vadd.f32 %v1628_v18, %v1477_v58  ;;  %v703_v23 = vadd.f32 %v1636_v19, %v1477_v58  ;;  %v662_v24 = vpop.f32.mrb[7].mxu0  ;;  %v694_v25 = vpop.f32.mrb[7].mxu1 }
 0x2eb   : > { %v663_v28 = vadd.f32 %v1477_v58, %v662_v24  ;;  %v695_v29 = vadd.f32 %v1477_v58, %v694_v25 }
 0x2ec   : > { %v709_v30 = vpack.c.bf16 %v671_v22, %v668_v20  ;;  %v713_v31 = vpack.c.bf16 %v703_v23, %v700_v21 }
 0x2ed   : > { %v708_v32 = vpack.c.bf16 %v663_v28, %v660_v26  ;;  %v712_v33 = vpack.c.bf16 %v695_v29, %v692_v27 }
 0x2ee   : > { %719 = vst [vmem:[%s715_s13 + $0x18] sm:$0xff] %v709_v30  ;;  %723 = vst [vmem:[%s715_s13 + $0x38] sm:$0xff] %v713_v31 }
 0x2ef   : > { %718 = vst [vmem:[%s715_s13 + $0x10] sm:$0xff] %v708_v32  ;;  %722 = vst [vmem:[%s715_s13 + $0x30] sm:$0xff] %v712_v33 }
 0x2f0 PF: > { %s3094_s3 = sld [smem:[#allocation28_spill]] }
 0x2f6   : > { %p1479_p1 = scmp.ne.s32.totalorder %s3094_s3, 0 }
 0x2f7   : > { %v2258_v34 = vmov (!%p1479_p1), 0.0  }
 0x2f8   : > { %727 = sbr.rel (%p1479_p1) target bundleno = 768 (0x300), region = 72  ;;  %728 = vst [vmem:[#allocation2] sm:$0xff] (!%p1479_p1), %v2258_v34  ;;  %729 = vst [vmem:[#allocation2 + $0x8] sm:$0xff] (!%p1479_p1), %v2258_v34 }
 0x2f9   : > { %730 = vst [vmem:[#allocation2 + $0x10] sm:$0xff] (!%p1479_p1), %v2258_v34  ;;  %731 = vst [vmem:[#allocation2 + $0x18] sm:$0xff] (!%p1479_p1), %v2258_v34 }
 0x2fa   : > { %732 = vst [vmem:[#allocation2 + $0x20] sm:$0xff] (!%p1479_p1), %v2258_v34  ;;  %733 = vst [vmem:[#allocation2 + $0x28] sm:$0xff] (!%p1479_p1), %v2258_v34 }
 0x2fb   : > { %734 = vst [vmem:[#allocation2 + $0x30] sm:$0xff] (!%p1479_p1), %v2258_v34  ;;  %735 = vst [vmem:[#allocation2 + $0x38] sm:$0xff] (!%p1479_p1), %v2258_v34 }
 0x2fc   : > { %736 = vst [vmem:[#allocation2 + $0x40] sm:$0xff] (!%p1479_p1), %v2258_v34  ;;  %737 = vst [vmem:[#allocation2 + $0x48] sm:$0xff] (!%p1479_p1), %v2258_v34 }
 0x2fd   : > { %738 = vst [vmem:[#allocation2 + $0x50] sm:$0xff] (!%p1479_p1), %v2258_v34  ;;  %739 = vst [vmem:[#allocation2 + $0x58] sm:$0xff] (!%p1479_p1), %v2258_v34 }
 0x2fe   : > { %740 = vst [vmem:[#allocation2 + $0x60] sm:$0xff] (!%p1479_p1), %v2258_v34  ;;  %741 = vst [vmem:[#allocation2 + $0x68] sm:$0xff] (!%p1479_p1), %v2258_v34 }
 0x2ff   : > { %742 = vst [vmem:[#allocation2 + $0x70] sm:$0xff] %v2258_v34  ;;  %743 = vst [vmem:[#allocation2 + $0x78] sm:$0xff] %v2258_v34 }
 0x300 PF: > { %v2752_v35 = vld [vmem:[%s2670_s4] sm:$0xf]  ;;  %v2755_v36 = vld [vmem:[%s2670_s4 + $0x4] sm:$0xf]  ;;  %v2758_v37 = vld [vmem:[%s2670_s4 + $0x8] sm:$0xf] }
 0x301   : > { %v2761_v38 = vld [vmem:[%s2670_s4 + $0xc] sm:$0xf]  ;;  %v2764_v39 = vld [vmem:[%s2670_s4 + $0x10] sm:$0xf]  ;;  %v2767_v40 = vld [vmem:[%s2670_s4 + $0x14] sm:$0xf] }
 0x302   : > { %v2770_v41 = vld [vmem:[%s2670_s4 + $0x18] sm:$0xf]  ;;  %v2773_v42 = vld [vmem:[%s2670_s4 + $0x1c] sm:$0xf]  ;;  %v2776_v43 = vld [vmem:[%s2670_s4 + $0x20] sm:$0xf] }
 0x303   : > { %v2779_v44 = vld [vmem:[%s2670_s4 + $0x24] sm:$0xf]  ;;  %v2782_v45 = vld [vmem:[%s2670_s4 + $0x28] sm:$0xf]  ;;  %v2785_v46 = vld [vmem:[%s2670_s4 + $0x2c] sm:$0xf] }
 0x304   : > { %v2788_v47 = vld [vmem:[%s2670_s4 + $0x30] sm:$0xf]  ;;  %v2791_v48 = vld [vmem:[%s2670_s4 + $0x34] sm:$0xf]  ;;  %v2794_v49 = vld [vmem:[%s2670_s4 + $0x38] sm:$0xf] }
 0x305   : > { %v2797_v50 = vld [vmem:[%s2670_s4 + $0x3c] sm:$0xf]  ;;  %s3095_s20 = sld [smem:[#allocation30_spill]] }
 0x30b   : > { %p1480_p11 = scmp.ne.s32.totalorder %s3095_s20, 0 }
 0x30c   : > { %s779_s10 = sshra.s32 (!%p1480_p11), %s2694_s8, 4  ;;  %v1482_v51 = vcombine.low (!%p1480_p11), %v2752_v35, %v2755_v36  ;;  %v1486_v52 = vcombine.low (!%p1480_p11), %v2776_v43, %v2779_v44  ;;  %v1483_v61 = vcombine.low (!%p1480_p11), %v2758_v37, %v2761_v38  ;;  %v1487_v62 = vcombine.low (!%p1480_p11), %v2782_v45, %v2785_v46  ;;  %v765_v3 = vld [vmem:[#allocation2 + $0x10] sm:$0xff] (!%p1480_p11)  ;;  %v763_v5 = vld [vmem:[#allocation2] sm:$0xff] (!%p1480_p11)  ;;  %v766_v9 = vld [vmem:[#allocation2 + $0x18] sm:$0xff] (!%p1480_p11) }
 0x30d   : > { %762 = sbr.rel (%p1480_p11) target bundleno = 1042 (0x412), region = 76  ;;  %s1481_s14 = sshll.u32 (!%p1480_p11), %s779_s10, 3  ;;  %v1484_v63 = vcombine.low (!%p1480_p11), %v2764_v39, %v2767_v40  ;;  %v1488_v0 = vcombine.low (!%p1480_p11), %v2788_v47, %v2791_v48  ;;  %v1485_v1 = vcombine.low (!%p1480_p11), %v2770_v41, %v2773_v42  ;;  %v1489_v2 = vcombine.low (!%p1480_p11), %v2794_v49, %v2797_v50  ;;  %v773_v4 = vld [vmem:[#allocation2 + $0x50] sm:$0xff] (!%p1480_p11)  ;;  %v771_v6 = vld [vmem:[#allocation2 + $0x40] sm:$0xff] (!%p1480_p11)  ;;  %v774_v10 = vld [vmem:[#allocation2 + $0x58] sm:$0xff] (!%p1480_p11) }
 0x30e   : > { %1653 = vmatprep.mubr.bf16.mxu0 (!%p1480_p11), %v1482_v51  ;;  %1661 = vmatprep.mubr.bf16.mxu1 (!%p1480_p11), %v1486_v52  ;;  %s2805_s27 = scalar_lea.vmem (!%p1480_p11), [#allocation3], %s1481_s14  ;;  %v764_v15 = vld [vmem:[#allocation2 + $0x8] sm:$0xff] (!%p1480_p11)  ;;  %v769_v27 = vld [vmem:[#allocation2 + $0x30] sm:$0xff] (!%p1480_p11)  ;;  %v767_v29 = vld [vmem:[#allocation2 + $0x20] sm:$0xff] (!%p1480_p11) }
 0x30f   : > { %v783_v53 = vld [vmem:[%s2805_s27] sm:$0xff] (!%p1480_p11)  ;;  %v784_v54 = vld [vmem:[%s2805_s27 + $0x8] sm:$0xff] (!%p1480_p11)  ;;  %v785_v55 = vld [vmem:[%s2805_s27 + $0x10] sm:$0xff] (!%p1480_p11) }
 0x310   : > { %1637 = vmatprep.subr.bf16.mxu0 (!%p1480_p11), %v783_v53  ;;  %1733 = vmatprep.subr.bf16.mxu1 (!%p1480_p11), %v783_v53  ;;  %v786_v56 = vld [vmem:[%s2805_s27 + $0x18] sm:$0xff] (!%p1480_p11)  ;;  %v787_v57 = vld [vmem:[%s2805_s27 + $0x20] sm:$0xff] (!%p1480_p11)  ;;  %v788_v58 = vld [vmem:[%s2805_s27 + $0x28] sm:$0xff] (!%p1480_p11) }
 0x311   : > { %1638 = vmatpush3.bf16.msra.mxu0 (!%p1480_p11), %v783_v53  ;;  %1741 = vmatpush3.bf16.msra.mxu1 (!%p1480_p11), %v783_v53  ;;  %v789_v59 = vld [vmem:[%s2805_s27 + $0x30] sm:$0xff] (!%p1480_p11)  ;;  %v790_v60 = vld [vmem:[%s2805_s27 + $0x38] sm:$0xff] (!%p1480_p11)  ;;  %v772_v16 = vld [vmem:[#allocation2 + $0x48] sm:$0xff] (!%p1480_p11) }
 0x312   : > { %1639 = vmatprep.subr.bf16.mxu0 (!%p1480_p11), %v784_v54  ;;  %1734 = vmatprep.subr.bf16.mxu1 (!%p1480_p11), %v784_v54  ;;  %v777_v28 = vld [vmem:[#allocation2 + $0x70] sm:$0xff] (!%p1480_p11)  ;;  %v775_v30 = vld [vmem:[#allocation2 + $0x60] sm:$0xff] (!%p1480_p11)  ;;  %v770_v33 = vld [vmem:[#allocation2 + $0x38] sm:$0xff] (!%p1480_p11) }
 0x313   : > { %v778_v34 = vld [vmem:[#allocation2 + $0x78] sm:$0xff] (!%p1480_p11) }
 0x315   : > { %1640 = vmatpush3.bf16.msra.mxu0 %v784_v54  ;;  %1742 = vmatpush3.bf16.msra.mxu1 %v784_v54 }
 0x316   : > { %1641 = vmatprep.subr.bf16.mxu0 %v785_v55  ;;  %1735 = vmatprep.subr.bf16.mxu1 %v785_v55 }
 0x319   : > { %1642 = vmatpush3.bf16.msra.mxu0 %v785_v55  ;;  %1743 = vmatpush3.bf16.msra.mxu1 %v785_v55  ;;  %v768_v55 = vld [vmem:[#allocation2 + $0x28] sm:$0xff] }
 0x31a   : > { %1643 = vmatprep.subr.bf16.mxu0 %v786_v56  ;;  %1736 = vmatprep.subr.bf16.mxu1 %v786_v56 }
 0x31d   : > { %1644 = vmatpush3.bf16.msra.mxu0 %v786_v56  ;;  %1744 = vmatpush3.bf16.msra.mxu1 %v786_v56  ;;  %v776_v56 = vld [vmem:[#allocation2 + $0x68] sm:$0xff] }
 0x31e   : > { %1645 = vmatprep.subr.bf16.mxu0 %v787_v57  ;;  %1737 = vmatprep.subr.bf16.mxu1 %v787_v57 }
 0x321   : > { %1646 = vmatpush3.bf16.msra.mxu0 %v787_v57  ;;  %1745 = vmatpush3.bf16.msra.mxu1 %v787_v57 }
 0x322   : > { %1647 = vmatprep.subr.bf16.mxu0 %v788_v58  ;;  %1738 = vmatprep.subr.bf16.mxu1 %v788_v58 }
 0x325   : > { %1648 = vmatpush3.bf16.msra.mxu0 %v788_v58  ;;  %1746 = vmatpush3.bf16.msra.mxu1 %v788_v58 }
 0x326   : > { %1649 = vmatprep.subr.bf16.mxu0 %v789_v59  ;;  %1739 = vmatprep.subr.bf16.mxu1 %v789_v59 }
 0x329   : > { %1650 = vmatpush3.bf16.msra.mxu0 %v789_v59  ;;  %1747 = vmatpush3.bf16.msra.mxu1 %v789_v59 }
 0x32a   : > { %1651 = vmatprep.subr.bf16.mxu0 %v790_v60  ;;  %1740 = vmatprep.subr.bf16.mxu1 %v790_v60 }
 0x32d   : > { %1652 = vmatpush3.bf16.msra.mxu0 %v790_v60  ;;  %1748 = vmatpush3.bf16.msra.mxu1 %v790_v60 }
 0x330   : > { %1654 = vmatmul.mubr.bf16.vlgmr.msra.gmra.mrb[0].mxu0 %v1483_v61  ;;  %1662 = vmatmul.mubr.bf16.vlgmr.msra.gmra.mrb[0].mxu1 %v1487_v62 }
 0x331   : > { %1657 = vmatprep.mubr.bf16.mxu0 %v1484_v63  ;;  %1665 = vmatprep.mubr.bf16.mxu1 %v1488_v0 }
 0x338   : > { %1658 = vmatmul.mubr.bf16.gmra.mrb[4].mxu0 %v1485_v1  ;;  %1666 = vmatmul.mubr.bf16.gmra.mrb[4].mxu1 %v1489_v2 }
 0x403   : > { %v1655_v7 = vpop.f32.mrb[0].mxu0  ;;  %v1663_v8 = vpop.f32.mrb[0].mxu1 }
 0x404   : > { %v938_v11 = vadd.f32 %v1655_v7, %v765_v3  ;;  %v946_v12 = vadd.f32 %v1663_v8, %v773_v4  ;;  %v873_v13 = vpop.f32.mrb[1].mxu0  ;;  %v905_v14 = vpop.f32.mrb[1].mxu1 }
 0x405   : > { %v936_v17 = vadd.f32 %v873_v13, %v763_v5  ;;  %v944_v18 = vadd.f32 %v905_v14, %v771_v6  ;;  %v1656_v19 = vpop.f32.mrb[2].mxu0  ;;  %v1664_v20 = vpop.f32.mrb[2].mxu1 }
 0x406   : > { %954 = vst [vmem:[#allocation2 + $0x10] sm:$0xff] %v938_v11  ;;  %962 = vst [vmem:[#allocation2 + $0x50] sm:$0xff] %v946_v12  ;;  %v939_v21 = vadd.f32 %v1656_v19, %v766_v9  ;;  %v947_v22 = vadd.f32 %v1664_v20, %v774_v10  ;;  %v876_v23 = vpop.f32.mrb[3].mxu0  ;;  %v908_v24 = vpop.f32.mrb[3].mxu1 }
 0x407   : > { %952 = vst [vmem:[#allocation2] sm:$0xff] %v936_v17  ;;  %960 = vst [vmem:[#allocation2 + $0x40] sm:$0xff] %v944_v18  ;;  %v937_v25 = vadd.f32 %v876_v23, %v764_v15  ;;  %v945_v26 = vadd.f32 %v908_v24, %v772_v16 }
 0x408   : > { %955 = vst [vmem:[#allocation2 + $0x18] sm:$0xff] %v939_v21  ;;  %963 = vst [vmem:[#allocation2 + $0x58] sm:$0xff] %v947_v22 }
 0x409   : > { %953 = vst [vmem:[#allocation2 + $0x8] sm:$0xff] %v937_v25  ;;  %961 = vst [vmem:[#allocation2 + $0x48] sm:$0xff] %v945_v26 }
 0x40b   : > { %v1659_v31 = vpop.f32.mrb[4].mxu0  ;;  %v1667_v32 = vpop.f32.mrb[4].mxu1 }
 0x40c   : > { %v942_v51 = vadd.f32 %v1659_v31, %v769_v27  ;;  %v950_v52 = vadd.f32 %v1667_v32, %v777_v28  ;;  %v889_v53 = vpop.f32.mrb[5].mxu0  ;;  %v921_v54 = vpop.f32.mrb[5].mxu1 }
 0x40d   : > { %v940_v57 = vadd.f32 %v889_v53, %v767_v29  ;;  %v948_v58 = vadd.f32 %v921_v54, %v775_v30  ;;  %v1660_v59 = vpop.f32.mrb[6].mxu0  ;;  %v1668_v60 = vpop.f32.mrb[6].mxu1 }
 0x40e   : > { %958 = vst [vmem:[#allocation2 + $0x30] sm:$0xff] %v942_v51  ;;  %966 = vst [vmem:[#allocation2 + $0x70] sm:$0xff] %v950_v52  ;;  %v943_v61 = vadd.f32 %v1660_v59, %v770_v33  ;;  %v951_v62 = vadd.f32 %v1668_v60, %v778_v34  ;;  %v892_v63 = vpop.f32.mrb[7].mxu0  ;;  %v924_v0 = vpop.f32.mrb[7].mxu1 }
 0x40f   : > { %956 = vst [vmem:[#allocation2 + $0x20] sm:$0xff] %v940_v57  ;;  %964 = vst [vmem:[#allocation2 + $0x60] sm:$0xff] %v948_v58  ;;  %v941_v1 = vadd.f32 %v892_v63, %v768_v55  ;;  %v949_v2 = vadd.f32 %v924_v0, %v776_v56 }
 0x410   : > { %959 = vst [vmem:[#allocation2 + $0x38] sm:$0xff] %v943_v61  ;;  %967 = vst [vmem:[#allocation2 + $0x78] sm:$0xff] %v951_v62 }
 0x411   : > { %957 = vst [vmem:[#allocation2 + $0x28] sm:$0xff] %v941_v1  ;;  %965 = vst [vmem:[#allocation2 + $0x68] sm:$0xff] %v949_v2 }
 0x412 PF: > { %s3096_s4 = sld [smem:[#allocation30_spill]] }
 0x418   : > { %p1490_p2 = scmp.ne.s32.totalorder %s3096_s4, 1 }
 0x419   : > { %s987_s12 = sshra.s32 (!%p1490_p2), %s2694_s8, 4  ;;  %v1492_v3 = vcombine.low (!%p1490_p2), %v2752_v35, %v2755_v36  ;;  %v1496_v4 = vcombine.low (!%p1490_p2), %v2776_v43, %v2779_v44  ;;  %v1493_v9 = vcombine.low (!%p1490_p2), %v2758_v37, %v2761_v38  ;;  %v1497_v10 = vcombine.low (!%p1490_p2), %v2782_v45, %v2785_v46  ;;  %v973_v38 = vld [vmem:[#allocation2 + $0x10] sm:$0xff] (!%p1490_p2)  ;;  %v971_v46 = vld [vmem:[#allocation2] sm:$0xff] (!%p1490_p2)  ;;  %v974_v15 = vld [vmem:[#allocation2 + $0x18] sm:$0xff] (!%p1490_p2) }
 0x41a   : > { %970 = sbr.rel (%p1490_p2) target bundleno = 1311 (0x51f), region = 80  ;;  %s1491_s7 = sshll.u32 (!%p1490_p2), %s987_s12, 3  ;;  %v1494_v11 = vcombine.low (!%p1490_p2), %v2764_v39, %v2767_v40  ;;  %v1498_v12 = vcombine.low (!%p1490_p2), %v2788_v47, %v2791_v48  ;;  %v1495_v13 = vcombine.low (!%p1490_p2), %v2770_v41, %v2773_v42  ;;  %v1499_v37 = vcombine.low (!%p1490_p2), %v2794_v49, %v2797_v50  ;;  %v981_v45 = vld [vmem:[#allocation2 + $0x50] sm:$0xff] (!%p1490_p2)  ;;  %v979_v14 = vld [vmem:[#allocation2 + $0x40] sm:$0xff] (!%p1490_p2)  ;;  %v982_v47 = vld [vmem:[#allocation2 + $0x58] sm:$0xff] (!%p1490_p2) }
 0x41b   : > { %1685 = vmatprep.mubr.bf16.mxu0 (!%p1490_p2), %v1492_v3  ;;  %1693 = vmatprep.mubr.bf16.mxu1 (!%p1490_p2), %v1496_v4  ;;  %s2833_s30 = scalar_lea.vmem (!%p1490_p2), [#allocation5], %s1491_s7  ;;  %v972_v19 = vld [vmem:[#allocation2 + $0x8] sm:$0xff] (!%p1490_p2)  ;;  %v977_v27 = vld [vmem:[#allocation2 + $0x30] sm:$0xff] (!%p1490_p2)  ;;  %v975_v29 = vld [vmem:[#allocation2 + $0x20] sm:$0xff] (!%p1490_p2) }
 0x41c   : > { %v991_v5 = vld [vmem:[%s2833_s30] sm:$0xff] (!%p1490_p2)  ;;  %v992_v6 = vld [vmem:[%s2833_s30 + $0x8] sm:$0xff] (!%p1490_p2)  ;;  %v993_v35 = vld [vmem:[%s2833_s30 + $0x10] sm:$0xff] (!%p1490_p2) }
 0x41d   : > { %1669 = vmatprep.subr.bf16.mxu0 (!%p1490_p2), %v991_v5  ;;  %1749 = vmatprep.subr.bf16.mxu1 (!%p1490_p2), %v991_v5  ;;  %v994_v36 = vld [vmem:[%s2833_s30 + $0x18] sm:$0xff] (!%p1490_p2)  ;;  %v995_v43 = vld [vmem:[%s2833_s30 + $0x20] sm:$0xff] (!%p1490_p2)  ;;  %v996_v44 = vld [vmem:[%s2833_s30 + $0x28] sm:$0xff] (!%p1490_p2) }
 0x41e   : > { %1670 = vmatpush3.bf16.msra.mxu0 (!%p1490_p2), %v991_v5  ;;  %1757 = vmatpush3.bf16.msra.mxu1 (!%p1490_p2), %v991_v5  ;;  %v997_v7 = vld [vmem:[%s2833_s30 + $0x30] sm:$0xff] (!%p1490_p2)  ;;  %v998_v8 = vld [vmem:[%s2833_s30 + $0x38] sm:$0xff] (!%p1490_p2)  ;;  %v980_v20 = vld [vmem:[#allocation2 + $0x48] sm:$0xff] (!%p1490_p2) }
 0x41f   : > { %1671 = vmatprep.subr.bf16.mxu0 (!%p1490_p2), %v992_v6  ;;  %1750 = vmatprep.subr.bf16.mxu1 (!%p1490_p2), %v992_v6  ;;  %v985_v28 = vld [vmem:[#allocation2 + $0x70] sm:$0xff] (!%p1490_p2)  ;;  %v983_v30 = vld [vmem:[#allocation2 + $0x60] sm:$0xff] (!%p1490_p2)  ;;  %v978_v33 = vld [vmem:[#allocation2 + $0x38] sm:$0xff] (!%p1490_p2) }
 0x420   : > { %v986_v34 = vld [vmem:[#allocation2 + $0x78] sm:$0xff] (!%p1490_p2)  ;;  %v976_v55 = vld [vmem:[#allocation2 + $0x28] sm:$0xff] (!%p1490_p2) }
 0x421   : > { %v984_v56 = vld [vmem:[#allocation2 + $0x68] sm:$0xff] }
 0x422   : > { %1672 = vmatpush3.bf16.msra.mxu0 %v992_v6  ;;  %1758 = vmatpush3.bf16.msra.mxu1 %v992_v6 }
 0x423   : > { %1673 = vmatprep.subr.bf16.mxu0 %v993_v35  ;;  %1751 = vmatprep.subr.bf16.mxu1 %v993_v35 }
 0x426   : > { %1674 = vmatpush3.bf16.msra.mxu0 %v993_v35  ;;  %1759 = vmatpush3.bf16.msra.mxu1 %v993_v35 }
 0x427   : > { %1675 = vmatprep.subr.bf16.mxu0 %v994_v36  ;;  %1752 = vmatprep.subr.bf16.mxu1 %v994_v36 }
 0x42a   : > { %1676 = vmatpush3.bf16.msra.mxu0 %v994_v36  ;;  %1760 = vmatpush3.bf16.msra.mxu1 %v994_v36 }
 0x42b   : > { %1677 = vmatprep.subr.bf16.mxu0 %v995_v43  ;;  %1753 = vmatprep.subr.bf16.mxu1 %v995_v43 }
 0x42e   : > { %1678 = vmatpush3.bf16.msra.mxu0 %v995_v43  ;;  %1761 = vmatpush3.bf16.msra.mxu1 %v995_v43 }
 0x42f   : > { %1679 = vmatprep.subr.bf16.mxu0 %v996_v44  ;;  %1754 = vmatprep.subr.bf16.mxu1 %v996_v44 }
 0x432   : > { %1680 = vmatpush3.bf16.msra.mxu0 %v996_v44  ;;  %1762 = vmatpush3.bf16.msra.mxu1 %v996_v44 }
 0x433   : > { %1681 = vmatprep.subr.bf16.mxu0 %v997_v7  ;;  %1755 = vmatprep.subr.bf16.mxu1 %v997_v7 }
 0x436   : > { %1682 = vmatpush3.bf16.msra.mxu0 %v997_v7  ;;  %1763 = vmatpush3.bf16.msra.mxu1 %v997_v7 }
 0x437   : > { %1683 = vmatprep.subr.bf16.mxu0 %v998_v8  ;;  %1756 = vmatprep.subr.bf16.mxu1 %v998_v8 }
 0x43a   : > { %1684 = vmatpush3.bf16.msra.mxu0 %v998_v8  ;;  %1764 = vmatpush3.bf16.msra.mxu1 %v998_v8 }
 0x43d   : > { %1686 = vmatmul.mubr.bf16.vlgmr.msra.gmra.mrb[0].mxu0 %v1493_v9  ;;  %1694 = vmatmul.mubr.bf16.vlgmr.msra.gmra.mrb[0].mxu1 %v1497_v10 }
 0x43e   : > { %1689 = vmatprep.mubr.bf16.mxu0 %v1494_v11  ;;  %1697 = vmatprep.mubr.bf16.mxu1 %v1498_v12 }
 0x445   : > { %1690 = vmatmul.mubr.bf16.gmra.mrb[4].mxu0 %v1495_v13  ;;  %1698 = vmatmul.mubr.bf16.gmra.mrb[4].mxu1 %v1499_v37 }
 0x510   : > { %v1687_v39 = vpop.f32.mrb[0].mxu0  ;;  %v1695_v40 = vpop.f32.mrb[0].mxu1 }
 0x511   : > { %v1146_v48 = vadd.f32 %v1687_v39, %v973_v38  ;;  %v1154_v16 = vadd.f32 %v1695_v40, %v981_v45  ;;  %v1081_v17 = vpop.f32.mrb[1].mxu0  ;;  %v1113_v18 = vpop.f32.mrb[1].mxu1 }
 0x512   : > { %v1144_v41 = vadd.f32 %v1081_v17, %v971_v46  ;;  %v1152_v42 = vadd.f32 %v1113_v18, %v979_v14  ;;  %v1688_v21 = vpop.f32.mrb[2].mxu0  ;;  %v1696_v49 = vpop.f32.mrb[2].mxu1 }
 0x513   : > { %1162 = vst [vmem:[#allocation2 + $0x10] sm:$0xff] %v1146_v48  ;;  %1170 = vst [vmem:[#allocation2 + $0x50] sm:$0xff] %v1154_v16  ;;  %v1147_v50 = vadd.f32 %v1688_v21, %v974_v15  ;;  %v1155_v22 = vadd.f32 %v1696_v49, %v982_v47  ;;  %v1084_v23 = vpop.f32.mrb[3].mxu0  ;;  %v1116_v24 = vpop.f32.mrb[3].mxu1 }
 0x514   : > { %1160 = vst [vmem:[#allocation2] sm:$0xff] %v1144_v41  ;;  %1168 = vst [vmem:[#allocation2 + $0x40] sm:$0xff] %v1152_v42  ;;  %v1145_v25 = vadd.f32 %v1084_v23, %v972_v19  ;;  %v1153_v26 = vadd.f32 %v1116_v24, %v980_v20 }
 0x515   : > { %1163 = vst [vmem:[#allocation2 + $0x18] sm:$0xff] %v1147_v50  ;;  %1171 = vst [vmem:[#allocation2 + $0x58] sm:$0xff] %v1155_v22 }
 0x516   : > { %1161 = vst [vmem:[#allocation2 + $0x8] sm:$0xff] %v1145_v25  ;;  %1169 = vst [vmem:[#allocation2 + $0x48] sm:$0xff] %v1153_v26 }
 0x518   : > { %v1691_v31 = vpop.f32.mrb[4].mxu0  ;;  %v1699_v32 = vpop.f32.mrb[4].mxu1 }
 0x519   : > { %v1150_v51 = vadd.f32 %v1691_v31, %v977_v27  ;;  %v1158_v52 = vadd.f32 %v1699_v32, %v985_v28  ;;  %v1097_v53 = vpop.f32.mrb[5].mxu0  ;;  %v1129_v54 = vpop.f32.mrb[5].mxu1 }
 0x51a   : > { %v1148_v57 = vadd.f32 %v1097_v53, %v975_v29  ;;  %v1156_v58 = vadd.f32 %v1129_v54, %v983_v30  ;;  %v1692_v59 = vpop.f32.mrb[6].mxu0  ;;  %v1700_v60 = vpop.f32.mrb[6].mxu1 }
 0x51b   : > { %1166 = vst [vmem:[#allocation2 + $0x30] sm:$0xff] %v1150_v51  ;;  %1174 = vst [vmem:[#allocation2 + $0x70] sm:$0xff] %v1158_v52  ;;  %v1151_v61 = vadd.f32 %v1692_v59, %v978_v33  ;;  %v1159_v62 = vadd.f32 %v1700_v60, %v986_v34  ;;  %v1100_v63 = vpop.f32.mrb[7].mxu0  ;;  %v1132_v0 = vpop.f32.mrb[7].mxu1 }
 0x51c   : > { %1164 = vst [vmem:[#allocation2 + $0x20] sm:$0xff] %v1148_v57  ;;  %1172 = vst [vmem:[#allocation2 + $0x60] sm:$0xff] %v1156_v58  ;;  %v1149_v1 = vadd.f32 %v1100_v63, %v976_v55  ;;  %v1157_v2 = vadd.f32 %v1132_v0, %v984_v56 }
 0x51d   : > { %1167 = vst [vmem:[#allocation2 + $0x38] sm:$0xff] %v1151_v61  ;;  %1175 = vst [vmem:[#allocation2 + $0x78] sm:$0xff] %v1159_v62 }
 0x51e   : > { %1165 = vst [vmem:[#allocation2 + $0x28] sm:$0xff] %v1149_v1  ;;  %1173 = vst [vmem:[#allocation2 + $0x68] sm:$0xff] %v1157_v2 }
 0x51f PF: > { %s3097_s8 = sld [smem:[#allocation28_spill]] }
 0x525   : > { %p1176_p7 = scmp.eq.s32.totalorder %s3097_s8, 1 }
 0x527   : > { %p1177_p9 = pnand %p1176_p7, %p383_p8 }
 0x528   : > { %v1181_v3 = vld [vmem:[#allocation2] sm:$0xff] (!%p1177_p9)  ;;  %v1182_v4 = vld [vmem:[#allocation2 + $0x8] sm:$0xff] (!%p1177_p9)  ;;  %s2862_s23 = sshra.s32 (!%p1177_p9), %s1473_s16, 4  ;;  %v1183_v5 = vld [vmem:[#allocation2 + $0x10] sm:$0xff] (!%p1177_p9) }
 0x529   : > { %1180 = sbr.rel (%p1177_p9) target bundleno = 1336 (0x538), region = 84  ;;  %v1197_v6 = vmax.f32 (!%p1177_p9), %v1181_v3, 0.0  ;;  %v1198_v35 = vmax.f32 (!%p1177_p9), %v1182_v4, 0.0  ;;  %s1500_s5 = sshll.u32 (!%p1177_p9), %s2862_s23, 3  ;;  %v1184_v36 = vld [vmem:[#allocation2 + $0x18] sm:$0xff] (!%p1177_p9)  ;;  %v1199_v43 = vmax.f32 (!%p1177_p9), %v1183_v5, 0.0 }
 0x52a   : > { %v1185_v44 = vld [vmem:[#allocation2 + $0x20] sm:$0xff] (!%p1177_p9)  ;;  %v1200_v7 = vmax.f32 (!%p1177_p9), %v1184_v36, 0.0  ;;  %v1186_v8 = vld [vmem:[#allocation2 + $0x28] sm:$0xff] (!%p1177_p9)  ;;  %v1187_v10 = vld [vmem:[#allocation2 + $0x30] sm:$0xff] (!%p1177_p9)  ;;  %s2870_s16 = scalar_lea.vmem (!%p1177_p9), [#allocation4], %s1500_s5 }
 0x52b   : > { %v1201_v9 = vmax.f32 (!%p1177_p9), %v1185_v44, 0.0  ;;  %v1188_v11 = vld [vmem:[#allocation2 + $0x38] sm:$0xff] (!%p1177_p9)  ;;  %v1213_v12 = vpack.c.bf16 (!%p1177_p9), %v1198_v35, %v1197_v6  ;;  %1233 = vst [vmem:[%s2705_s26] sm:$0xff] (!%p1177_p9), %v1197_v6  ;;  %1234 = vst [vmem:[%s2705_s26 + $0x8] sm:$0xff] (!%p1177_p9), %v1198_v35  ;;  %v1202_v13 = vmax.f32 (!%p1177_p9), %v1186_v8, 0.0  ;;  %v1203_v37 = vmax.f32 (!%p1177_p9), %v1187_v10, 0.0  ;;  %v1189_v45 = vld [vmem:[#allocation2 + $0x40] sm:$0xff] (!%p1177_p9) }
 0x52c   : > { %1235 = vst [vmem:[%s2705_s26 + $0x10] sm:$0xff] (!%p1177_p9), %v1199_v43  ;;  %v1204_v38 = vmax.f32 (!%p1177_p9), %v1188_v11, 0.0  ;;  %v1190_v46 = vld [vmem:[#allocation2 + $0x48] sm:$0xff] (!%p1177_p9)  ;;  %v1191_v14 = vld [vmem:[#allocation2 + $0x50] sm:$0xff] (!%p1177_p9)  ;;  %v1214_v39 = vpack.c.bf16 (!%p1177_p9), %v1200_v7, %v1199_v43  ;;  %1236 = vst [vmem:[%s2705_s26 + $0x18] sm:$0xff] (!%p1177_p9), %v1200_v7  ;;  %v1205_v40 = vmax.f32 (!%p1177_p9), %v1189_v45, 0.0 }
 0x52d   : > { %1237 = vst [vmem:[%s2705_s26 + $0x20] sm:$0xff] (!%p1177_p9), %v1201_v9  ;;  %v1206_v15 = vmax.f32 (!%p1177_p9), %v1190_v46, 0.0  ;;  %v1192_v47 = vld [vmem:[#allocation2 + $0x58] sm:$0xff] (!%p1177_p9)  ;;  %v1207_v48 = vmax.f32 (!%p1177_p9), %v1191_v14, 0.0  ;;  %v1193_v16 = vld [vmem:[#allocation2 + $0x60] sm:$0xff] (!%p1177_p9)  ;;  %v1194_v17 = vld [vmem:[#allocation2 + $0x68] sm:$0xff] (!%p1177_p9)  ;;  %v1215_v18 = vpack.c.bf16 (!%p1177_p9), %v1202_v13, %v1201_v9 }
 0x52e   : > { %1225 = vst [vmem:[%s2870_s16] sm:$0xff] (!%p1177_p9), %v1213_v12  ;;  %1238 = vst [vmem:[%s2705_s26 + $0x28] sm:$0xff] (!%p1177_p9), %v1202_v13  ;;  %v1216_v19 = vpack.c.bf16 (!%p1177_p9), %v1204_v38, %v1203_v37  ;;  %v1208_v20 = vmax.f32 (!%p1177_p9), %v1192_v47, 0.0  ;;  %v1209_v41 = vmax.f32 (!%p1177_p9), %v1193_v16, 0.0  ;;  %v1195_v42 = vld [vmem:[#allocation2 + $0x70] sm:$0xff] (!%p1177_p9)  ;;  %v1196_v21 = vld [vmem:[#allocation2 + $0x78] sm:$0xff] (!%p1177_p9)  ;;  %v1210_v50 = vmax.f32 (!%p1177_p9), %v1194_v17, 0.0 }
 0x52f   : > { %1239 = vst [vmem:[%s2705_s26 + $0x30] sm:$0xff] (!%p1177_p9), %v1203_v37  ;;  %1240 = vst [vmem:[%s2705_s26 + $0x38] sm:$0xff] (!%p1177_p9), %v1204_v38  ;;  %v1217_v49 = vpack.c.bf16 (!%p1177_p9), %v1206_v15, %v1205_v40  ;;  %v1211_v22 = vmax.f32 (!%p1177_p9), %v1195_v42, 0.0  ;;  %v1212_v23 = vmax.f32 (!%p1177_p9), %v1196_v21, 0.0 }
 0x530   : > { %1226 = vst [vmem:[%s2870_s16 + $0x8] sm:$0xff] %v1214_v39  ;;  %1241 = vst [vmem:[%s2705_s26 + $0x40] sm:$0xff] %v1205_v40  ;;  %v1218_v24 = vpack.c.bf16 %v1208_v20, %v1207_v48  ;;  %v1219_v25 = vpack.c.bf16 %v1210_v50, %v1209_v41 }
 0x531   : > { %1242 = vst [vmem:[%s2705_s26 + $0x48] sm:$0xff] %v1206_v15  ;;  %1243 = vst [vmem:[%s2705_s26 + $0x50] sm:$0xff] %v1207_v48  ;;  %v1220_v26 = vpack.c.bf16 %v1212_v23, %v1211_v22 }
 0x532   : > { %1227 = vst [vmem:[%s2870_s16 + $0x10] sm:$0xff] %v1215_v18  ;;  %1228 = vst [vmem:[%s2870_s16 + $0x18] sm:$0xff] %v1216_v19 }
 0x533   : > { %1244 = vst [vmem:[%s2705_s26 + $0x58] sm:$0xff] %v1208_v20  ;;  %1245 = vst [vmem:[%s2705_s26 + $0x60] sm:$0xff] %v1209_v41 }
 0x534   : > { %1229 = vst [vmem:[%s2870_s16 + $0x20] sm:$0xff] %v1217_v49  ;;  %1246 = vst [vmem:[%s2705_s26 + $0x68] sm:$0xff] %v1210_v50 }
 0x535   : > { %1247 = vst [vmem:[%s2705_s26 + $0x70] sm:$0xff] %v1211_v22  ;;  %1248 = vst [vmem:[%s2705_s26 + $0x78] sm:$0xff] %v1212_v23 }
 0x536   : > { %1230 = vst [vmem:[%s2870_s16 + $0x28] sm:$0xff] %v1218_v24  ;;  %1231 = vst [vmem:[%s2870_s16 + $0x30] sm:$0xff] %v1219_v25 }
 0x537   : > { %1232 = vst [vmem:[%s2870_s16 + $0x38] sm:$0xff] %v1220_v26 }
 0x538 PF: > { %p1249_p13 = pnand %p1176_p7, %p561_p4 }
 0x539   : > { %v1253_v27 = vld [vmem:[#allocation2] sm:$0xff] (!%p1249_p13)  ;;  %v1254_v28 = vld [vmem:[#allocation2 + $0x8] sm:$0xff] (!%p1249_p13)  ;;  %v1255_v29 = vld [vmem:[#allocation2 + $0x10] sm:$0xff] (!%p1249_p13) }
 0x53a   : > { %1252 = sbr.rel (%p1249_p13) target bundleno = 1346 (0x542), region = 88  ;;  %1269 = vst [vmem:[%s2705_s26] sm:$0xff] (!%p1249_p13), %v1253_v27  ;;  %1270 = vst [vmem:[%s2705_s26 + $0x8] sm:$0xff] (!%p1249_p13), %v1254_v28  ;;  %v1256_v30 = vld [vmem:[#allocation2 + $0x18] sm:$0xff] (!%p1249_p13)  ;;  %v1257_v31 = vld [vmem:[#allocation2 + $0x20] sm:$0xff] (!%p1249_p13) }
 0x53b   : > { %1271 = vst [vmem:[%s2705_s26 + $0x10] sm:$0xff] (!%p1249_p13), %v1255_v29  ;;  %v1258_v32 = vld [vmem:[#allocation2 + $0x28] sm:$0xff] (!%p1249_p13)  ;;  %1272 = vst [vmem:[%s2705_s26 + $0x18] sm:$0xff] (!%p1249_p13), %v1256_v30  ;;  %v1259_v33 = vld [vmem:[#allocation2 + $0x30] sm:$0xff] (!%p1249_p13) }
 0x53c   : > { %1273 = vst [vmem:[%s2705_s26 + $0x20] sm:$0xff] (!%p1249_p13), %v1257_v31  ;;  %1274 = vst [vmem:[%s2705_s26 + $0x28] sm:$0xff] (!%p1249_p13), %v1258_v32  ;;  %v1260_v34 = vld [vmem:[#allocation2 + $0x38] sm:$0xff] (!%p1249_p13)  ;;  %v1261_v51 = vld [vmem:[#allocation2 + $0x40] sm:$0xff] (!%p1249_p13) }
 0x53d   : > { %1275 = vst [vmem:[%s2705_s26 + $0x30] sm:$0xff] (!%p1249_p13), %v1259_v33  ;;  %1276 = vst [vmem:[%s2705_s26 + $0x38] sm:$0xff] (!%p1249_p13), %v1260_v34  ;;  %v1262_v52 = vld [vmem:[#allocation2 + $0x48] sm:$0xff] (!%p1249_p13)  ;;  %v1263_v53 = vld [vmem:[#allocation2 + $0x50] sm:$0xff] (!%p1249_p13) }
 0x53e   : > { %1277 = vst [vmem:[%s2705_s26 + $0x40] sm:$0xff] (!%p1249_p13), %v1261_v51  ;;  %v1264_v54 = vld [vmem:[#allocation2 + $0x58] sm:$0xff] (!%p1249_p13)  ;;  %1278 = vst [vmem:[%s2705_s26 + $0x48] sm:$0xff] (!%p1249_p13), %v1262_v52  ;;  %v1265_v55 = vld [vmem:[#allocation2 + $0x60] sm:$0xff] (!%p1249_p13) }
 0x53f   : > { %1279 = vst [vmem:[%s2705_s26 + $0x50] sm:$0xff] (!%p1249_p13), %v1263_v53  ;;  %1280 = vst [vmem:[%s2705_s26 + $0x58] sm:$0xff] (!%p1249_p13), %v1264_v54  ;;  %v1266_v56 = vld [vmem:[#allocation2 + $0x68] sm:$0xff] (!%p1249_p13)  ;;  %v1267_v57 = vld [vmem:[#allocation2 + $0x70] sm:$0xff] (!%p1249_p13) }
 0x540   : > { %1281 = vst [vmem:[%s2705_s26 + $0x60] sm:$0xff] (!%p1249_p13), %v1265_v55  ;;  %1282 = vst [vmem:[%s2705_s26 + $0x68] sm:$0xff] (!%p1249_p13), %v1266_v56  ;;  %v1268_v58 = vld [vmem:[#allocation2 + $0x78] sm:$0xff] (!%p1249_p13) }
 0x541   : > { %1283 = vst [vmem:[%s2705_s26 + $0x70] sm:$0xff] %v1267_v57  ;;  %1284 = vst [vmem:[%s2705_s26 + $0x78] sm:$0xff] %v1268_v58 }
 0x542 PF: > { %s3102_s9 = sld [smem:[#allocation29_spill]]  ;;  %s3103_s6 = sld [smem:[#allocation30_spill]] }
 0x543   : > { %s3105_s13 = sld [smem:[#allocation33_spill]]  ;;  %s1301_s10 = sshll.u32 %s2705_s26, 4  ;;  %s2914_s10 = int_to_ptr.vmem [resolvable:$true] %s1301_s10 }
 0x544   : > { %s3106_s7 = sld [smem:[#allocation45_spill]]  ;;  %s2923_s8 = scalar_lea.sflag [#allocation10], %s373_s29 }
 0x545   : > { %s2071_s11 = scalar_lea.vmem %s2914_s10, 2048  ;;  %s2259_s26 = smov [#allocation16]  }
 0x546   : > { %p2072_p3 = scmp.ne.s32.totalorder %s2914_s10, %s2071_s11  ;;  %s2075_s21 = sshll.u32 %s2259_s26, 4  ;;  %s2076_s21 = int_to_ptr.vmem [resolvable:$false] %s2075_s21 }
 0x547   : > { %s2077_s23 = scalar_lea.vmem %s2076_s21, 4096  ;;  %p2078_p0 = scmp.lt.s32.totalorder %s2914_s10, %s2076_s21 }
 0x548   : > { %s1502_s3 = sshll.u32 %s3102_s9, 4  ;;  %s1503_s20 = sshll.u32 %s3103_s6, 5 }
 0x549   : > { %s1298_s14 = sadd.s32 %s1503_s20, %s1502_s3  ;;  %p3107_p5 = scmp.ne.s32.totalorder %s3105_s13, 0 }
 0x54a   : > { %s1504_s27 = sshll.u32 %s1298_s14, 7  ;;  %p2079_p12 = scmp.lt.s32.totalorder %s2077_s23, %s2071_s11 }
 0x54b   : > { %s2919_s30 = scalar_lea.hbm %s3106_s7, %s1504_s27  ;;  %p2073_p6 = pnand %p2072_p3, %p3107_p5 }
 0x54c   : > { %p2080_p4 = por %p2079_p12, %p2078_p0 }
 0x54d   : > { %p2074_p8 = pneg %p2073_p6 }
 0x54f   : > { %p2081_p10 = pnand %p2080_p4, %p2074_p8 }
 0x551   : > { %2084 = shalt.err (!%p2081_p10)
}
 0x552   : > { %s2085_s29 = scalar_lea.hbm %s2919_s30, 2048  ;;  %s2089_s24 = scalar_lea.hbm %s3106_s7, 8192 }
 0x553   : > { %p2086_p1 = scmp.ne.s32.totalorder %s2919_s30, %s2085_s29  ;;  %p2090_p7 = scmp.lt.u32.totalorder %s2919_s30, %s3106_s7 }
 0x554   : > { %p2091_p9 = scmp.lt.u32.totalorder %s2089_s24, %s2085_s29  ;;  %p2093_p3 = scmp.lt.u32.totalorder %s2085_s29, %s2919_s30 }
 0x555   : > { %p2087_p11 = pnand %p2086_p1, %p3107_p5 }
 0x556   : > { %p2092_p13 = por %p2091_p9, %p2090_p7 }
 0x557   : > { %p2088_p2 = pneg %p2087_p11 }
 0x558   : > { %p2094_p6 = por %p2093_p3, %p2092_p13 }
 0x55a   : > { %p2095_p8 = pnand %p2094_p6, %p2088_p2 }
 0x55c   : > { %2098 = shalt.err (!%p2095_p8)
}
 0x55d   : > { %s2260_s6 = smov 128   ;;  %s2261_s28 = smov 8  }
 0x55e   : > { %1779 = dma.vmem_to_hbm [thread:$0]  (%p3107_p5), %s2914_s10, 2048, %s2919_s30, %s2923_s8, %s2260_s6, %s2260_s6, %s2261_s28  }
 0x55f PF: > { %s3108_s3 = sld [smem:[#allocation25_spill]]  ;;  %s3109_s20 = sld [smem:[#allocation34_spill]] }
 0x560   : > { %p1806_p0 = scmp.ge.s32.totalorder %s2247_s25, 2 }
 0x565   : > { %s1316_s14 = sand.u32 1, %s3108_s3   ;;  %p3110_p12 = scmp.ne.s32.totalorder %s3109_s20, 0 }
 0x566   : > { %s1317_s27 = scalar_lea.sflag [#allocation10], %s1316_s14 }
 0x567   : > { %p1798_p4 = pnand %p1806_p0, %p3110_p12 }
 0x569   : > { %2182 = dma.done.wait (!%p1798_p4), %s1317_s27, 2048  }
 0x56a   : > { %2184 = vsyncadd (!%p1798_p4), %s1317_s27, 4294965248  ;;  %s31_s25 = sadd.s32 1, %s2247_s25   ;;  %s3112_s11 = sld [smem:[#allocation26_spill]] }
 0x56b   : > { %p2952_p10 = scmp.ge.s32.totalorder %s31_s25, 10   ;;  %s3113_s12 = sld [smem:[#allocation27_spill]] }
 0x56c   : > { %s3114_s13 = sld [smem:[#allocation38_spill]]  ;;  %s3115_s10 = sld [smem:[#allocation40_spill]] }
 0x56d   : > { %s3116_s30 = sld [smem:[#allocation39_spill]]  ;;  %s3117_s20 = sld [smem:[#allocation31_spill]] }
 0x56e   : > { %s3118_s21 = sld [smem:[#allocation32_spill]]  ;;  %s3119_s8 = sld [smem:[#allocation35_spill]] }
 0x56f   : > { %s3120_s23 = sld [smem:[#allocation36_spill]]  ;;  %s3121_s24 = sld [smem:[#allocation37_spill]] }
 0x570   : > { %s3122_s14 = smov %s2203_s15  ;;  %s3123_s15 = smov %s2207_s0 }
 0x571   : > { %s3125_s16 = smov %s2215_s17  ;;  %s3126_s17 = smov %s2219_s18 }
 0x572   : > { %s3124_s0 = smov %s3115_s10  ;;  %s3128_s19 = smov %s2235_s22 }
 0x573   : > { %s3127_s18 = smov %s3116_s30  ;;  %30 = sbr.rel (!%p2952_p10) target bundleno = 27 (0x1b), region = 144 }
 0x574   : > { %s3129_s22 = smov %s3119_s8 }
 0x57a   :  { %1322 = vsyncpa [#allocation9], 1 }
 0x57b   :  { %1324 = vsyncpa [#allocation9 + $0x1], 1 }
 0x57c   :  { %1325 = vsyncpa [#allocation12], 1 }
 0x57d   :  { %1327 = vsyncpa [#allocation12 + $0x1], 1 }
 0x57e   :  { %1328 = vsyncpa [#allocation15], 1 }
 0x57f   :  { %1329 = vsyncpa [#allocation10], 1 }
 0x580   :  { %1331 = vsyncpa [#allocation10 + $0x1], 1 }

</bundles_post_ra>
